<compile_context>
chip_gen: v7x
topology: tpu7x:2x2x1
jax: 0.10.0
libtpu: 0.0.40
codegen_flags: <defaults>
</compile_context>

<pallas_src>
import jax
import jax.numpy as jnp
from jax import lax
from jax.experimental import pallas as pl
from jax.experimental.pallas import tpu as pltpu

VOCAB = 30000
DIM_E = 32      # dim_embedding
DIM_H = 32      # dim_hidden (module default is 100; small value per task)


def lstm_kernel(data_ref,     # (T, BB, E)  embedded sequence (time-major)
                mask_ref,     # (T, BB, 1)  f32 {0,1} change_mask per step
                wg_ref,       # (E+H, 4H)   fused gate weights [f|i|o|c]
                bg_ref,       # (1, 4H)     fused gate bias
                out_ref,      # (BB, H)     final hidden state
                h_scr, c_scr):  # (BB, H) VMEM scratch
    T, BB, E = data_ref.shape
    H = h_scr.shape[1]

    h_scr[...] = jnp.zeros_like(h_scr)
    c_scr[...] = jnp.zeros_like(c_scr)

    # Hoist loop-invariant reads / broadcasts out of the serial time loop.
    wg_x = wg_ref[:E, :]                                   # (E, 4H)
    wg_h = wg_ref[E:, :]                                   # (H, 4H)
    bg = bg_ref[...]                                       # (1, 4H)
    lane = lax.broadcasted_iota(jnp.int32, (BB, 4 * H), 1)
    sig_lanes = lane < 3 * H                               # sigmoid on [f|i|o]

    def step(t, carry):
        x = data_ref[t]                                    # (BB, E)
        m = mask_ref[t]                                    # (BB, 1)
        h = h_scr[...]
        c = c_scr[...]

        # xh @ Wg == x @ Wg[:E] + h @ Wg[E:]  -- one lane-dense (BB, 4H) result
        g = (jnp.dot(x, wg_x, preferred_element_type=jnp.float32)
             + jnp.dot(h, wg_h, preferred_element_type=jnp.float32)
             + bg)

        # one wide sigmoid + one wide tanh over the 128-lane gate block
        act = jnp.where(sig_lanes, jax.nn.sigmoid(g), jnp.tanh(g))

        f = act[:, 0:H]
        i = act[:, H:2 * H]
        o = act[:, 2 * H:3 * H]
        cb = act[:, 3 * H:4 * H]

        new_c = c * f + i * cb
        new_h = o * jnp.tanh(new_c)

        upd = m > 0.0                                      # (BB, 1) -> broadcast
        c_scr[...] = jnp.where(upd, new_c, c)
        h_scr[...] = jnp.where(upd, new_h, h)
        return carry

    # T is a small compile-time constant: full unroll so MXU/EUP latencies of
    # step t hide behind independent work of neighbouring steps.
    lax.fori_loop(0, T, step, 0, unroll=True)

    out_ref[...] = h_scr[...]


def init_params(key):
    ks = jax.random.split(key, 11)
    d = DIM_E + DIM_H
    p = {
        "embedding": 0.1 * jax.random.normal(ks[0], (VOCAB, DIM_E), jnp.float32),
        "Wfh": 0.1 * jax.random.normal(ks[1], (d, DIM_H), jnp.float32),
        "bfh": jax.random.normal(ks[2], (DIM_H,), jnp.float32),
        "Wih": 0.1 * jax.random.normal(ks[3], (d, DIM_H), jnp.float32),
        "bih": jax.random.normal(ks[4], (DIM_H,), jnp.float32),
        "Woh": 0.1 * jax.random.normal(ks[5], (d, DIM_H), jnp.float32),
        "boh": jax.random.normal(ks[6], (DIM_H,), jnp.float32),
        "Wch": 0.1 * jax.random.normal(ks[7], (d, DIM_H), jnp.float32),
        "bch": jax.random.normal(ks[8], (DIM_H,), jnp.float32),
        "Wo": 0.1 * jax.random.normal(ks[9], (DIM_H, 1), jnp.float32),
        "bo": jax.random.normal(ks[10], (1,), jnp.float32),
    }
    return p


def lstm_forward(tokens, params, block_b=128):
    B, T = tokens.shape
    E, H = DIM_E, DIM_H

    # ---- JAX glue: embedding gather, time-major transpose, token-id mask ----
    emb = params["embedding"][tokens]                      # (B, T, E)
    data_tbe = jnp.transpose(emb, (1, 0, 2))               # (T, B, E)
    # change_mask from token ids (== torch's embedding comparison semantics)
    mask_tb1 = (tokens != tokens[:, T - 1:T]).astype(jnp.float32).T[..., None]

    # Fuse gate weights/biases: [f | i | o | c] along the lane axis -> 4H = 128
    Wg = jnp.concatenate(
        [params["Wfh"], params["Wih"], params["Woh"], params["Wch"]], axis=1)
    bg = jnp.concatenate(
        [params["bfh"], params["bih"], params["boh"], params["bch"]]
    ).reshape(1, 4 * H)

    # ---- batch-block grid (parallel axis -> shards across v7x's 2 TCs) ----
    bb = min(block_b, B)
    Bp = ((B + bb - 1) // bb) * bb
    if Bp != B:
        pad = Bp - B
        data_tbe = jnp.pad(data_tbe, ((0, 0), (0, pad), (0, 0)))
        mask_tb1 = jnp.pad(mask_tb1, ((0, 0), (0, pad), (0, 0)))
    grid = (Bp // bb,)

    h = pl.pallas_call(
        lstm_kernel,
        out_shape=jax.ShapeDtypeStruct((Bp, H), jnp.float32),
        grid_spec=pltpu.PrefetchScalarGridSpec(
            num_scalar_prefetch=0,
            grid=grid,
            in_specs=[
                pl.BlockSpec((T, bb, E), lambda b: (0, b, 0)),
                pl.BlockSpec((T, bb, 1), lambda b: (0, b, 0)),
                pl.BlockSpec((E + H, 4 * H), lambda b: (0, 0)),
                pl.BlockSpec((1, 4 * H), lambda b: (0, 0)),
            ],
            out_specs=pl.BlockSpec((bb, H), lambda b: (b, 0)),
            scratch_shapes=[pltpu.VMEM((bb, H), jnp.float32),
                            pltpu.VMEM((bb, H), jnp.float32)],
        ),
        compiler_params=pltpu.CompilerParams(
            dimension_semantics=("parallel",)),
    )(data_tbe, mask_tb1, Wg, bg)

    h = h[:B]
    # tiny (H, 1) head + sigmoid in glue (keeps the kernel output lane-dense)
    return jax.nn.sigmoid(h @ params["Wo"] + params["bo"])


def lstm_reference(tokens, params):
    # pure-JAX replica of the torch forward (masked-update formulation)
    emb = params["embedding"][tokens]                      # (B, T, E)
    B, T, _ = emb.shape
    h = jnp.zeros((B, DIM_H), jnp.float32)
    c = jnp.zeros((B, DIM_H), jnp.float32)
    x_last = emb[:, T - 1, :]
    for t in range(T):
        x = emb[:, t, :]
        mask = jnp.any(x != x_last, axis=1, keepdims=True)
        xh = jnp.concatenate([x, h], axis=1)
        f = jax.nn.sigmoid(xh @ params["Wfh"] + params["bfh"])
        i = jax.nn.sigmoid(xh @ params["Wih"] + params["bih"])
        o = jax.nn.sigmoid(xh @ params["Woh"] + params["boh"])
        cb = jnp.tanh(xh @ params["Wch"] + params["bch"])
        new_c = c * f + i * cb
        new_h = o * jnp.tanh(new_c)
        c = jnp.where(mask, new_c, c)
        h = jnp.where(mask, new_h, h)
    return jax.nn.sigmoid(h @ params["Wo"] + params["bo"])


if __name__ == "__main__":
    key = jax.random.PRNGKey(0)
    pkey, dkey = jax.random.split(key)
    params = init_params(pkey)

    B, T = 8, 8
    tokens = jax.random.randint(dkey, (B, T), 1, VOCAB, dtype=jnp.int32)
    # last column acts as the "pad" token the change_mask compares against;
    # pad a couple of rows early to exercise the masked (frozen-state) path.
    tokens = tokens.at[:, T - 1].set(0)
    tokens = tokens.at[0, 4:].set(0)
    tokens = tokens.at[3, 6:].set(0)

    out = lstm_forward(tokens, params)
    out = jax.block_until_ready(out)

    ref = lstm_reference(tokens, params)
    assert out.shape == (B, 1)
    assert jnp.allclose(out, ref, rtol=1e-5, atol=1e-6), (out, ref)

    print("KERNEL_OK")
</pallas_src>

<mosaic_0001>
module attributes {stable_mosaic.version = 11 : i64} {
  func.func @lstm_kernel(%arg0: i32, %arg1: memref<8x8x32xf32, #tpu.memory_space<vmem>>, %arg2: memref<8x8x1xf32, #tpu.memory_space<vmem>>, %arg3: memref<64x128xf32, #tpu.memory_space<vmem>>, %arg4: memref<1x128xf32, #tpu.memory_space<vmem>>, %arg5: memref<8x32xf32, #tpu.memory_space<vmem>>, %arg6: memref<8x32xf32, #tpu.memory_space<vmem>>, %arg7: memref<8x32xf32, #tpu.memory_space<vmem>>) attributes {dimension_semantics = [#tpu.dimension_semantics<parallel>], iteration_bounds = array<i64: 1>, scalar_prefetch = 0 : i64, scratch_operands = 2 : i64, tpu.core_type = #tpu.core_type<tc>, window_params = [{transform_indices = @transform_0, window_bounds = array<i64: 8, 8, 32>}, {transform_indices = @transform_1, window_bounds = array<i64: 8, 8, 1>}, {pipeline_mode = #tpu.pipeline_mode<synchronous>, transform_indices = @transform_2, window_bounds = array<i64: 64, 128>}, {pipeline_mode = #tpu.pipeline_mode<synchronous>, transform_indices = @transform_3, window_bounds = array<i64: 1, 128>}, {transform_indices = @transform_4, window_bounds = array<i64: 8, 32>}]} {
    %cst = arith.constant 0.000000e+00 : f32
    %0 = vector.broadcast %cst : f32 to vector<8x32xf32>
    %c0 = arith.constant 0 : index
    %c0_0 = arith.constant 0 : index
    %1 = vector.load %arg6[%c0, %c0_0] : memref<8x32xf32, #tpu.memory_space<vmem>>, vector<8x32xf32>
    tpu.vector_store %arg6[%c0, %c0_0], %0 {strides = array<i32>} : memref<8x32xf32, #tpu.memory_space<vmem>>, vector<8x32xf32>,
    %cst_1 = arith.constant 0.000000e+00 : f32
    %2 = vector.broadcast %cst_1 : f32 to vector<8x32xf32>
    %c0_2 = arith.constant 0 : index
    %c0_3 = arith.constant 0 : index
    %3 = vector.load %arg7[%c0_2, %c0_3] : memref<8x32xf32, #tpu.memory_space<vmem>>, vector<8x32xf32>
    tpu.vector_store %arg7[%c0_2, %c0_3], %2 {strides = array<i32>} : memref<8x32xf32, #tpu.memory_space<vmem>>, vector<8x32xf32>,
    %c0_4 = arith.constant 0 : index
    %c0_5 = arith.constant 0 : index
    %4 = vector.load %arg3[%c0_4, %c0_5] : memref<64x128xf32, #tpu.memory_space<vmem>>, vector<32x128xf32>
    %c32 = arith.constant 32 : index
    %c0_6 = arith.constant 0 : index
    %5 = vector.load %arg3[%c32, %c0_6] : memref<64x128xf32, #tpu.memory_space<vmem>>, vector<32x128xf32>
    %c0_7 = arith.constant 0 : index
    %c0_8 = arith.constant 0 : index
    %6 = vector.load %arg4[%c0_7, %c0_8] : memref<1x128xf32, #tpu.memory_space<vmem>>, vector<1x128xf32>
    %7 = tpu.iota {dimensions = array<i32: 1>} : vector<8x128xi32>
    %c96_i32 = arith.constant 96 : i32
    %8 = vector.broadcast %c96_i32 : i32 to vector<8x128xi32>
    %9 = arith.cmpi slt, %7, %8 : vector<8x128xi32>
    %c0_i32 = arith.constant 0 : i32
    %10 = arith.index_cast %c0_i32 : i32 to index
    %c0_9 = arith.constant 0 : index
    %c0_10 = arith.constant 0 : index
    %11 = vector.load %arg1[%10, %c0_9, %c0_10] : memref<8x8x32xf32, #tpu.memory_space<vmem>>, vector<1x8x32xf32>
    %12 = vector.shape_cast %11 : vector<1x8x32xf32> to vector<8x32xf32>
    %13 = arith.index_cast %c0_i32 : i32 to index
    %c0_11 = arith.constant 0 : index
    %c0_12 = arith.constant 0 : index
    %14 = vector.load %arg2[%13, %c0_11, %c0_12] : memref<8x8x1xf32, #tpu.memory_space<vmem>>, vector<1x8x1xf32>
    %15 = vector.shape_cast %14 : vector<1x8x1xf32> to vector<8x1xf32>
    %c0_13 = arith.constant 0 : index
    %c0_14 = arith.constant 0 : index
    %16 = vector.load %arg6[%c0_13, %c0_14] : memref<8x32xf32, #tpu.memory_space<vmem>>, vector<8x32xf32>
    %c0_15 = arith.constant 0 : index
    %c0_16 = arith.constant 0 : index
    %17 = vector.load %arg7[%c0_15, %c0_16] : memref<8x32xf32, #tpu.memory_space<vmem>>, vector<8x32xf32>
    %cst_17 = arith.constant dense<0.000000e+00> : vector<8x128xf32>
    %18 = tpu.matmul %12, %4, %cst_17 {dimension_numbers = #tpu.dot_dimension_numbers<[1], [0], [0], [1], [0, 0, 1, 1], [], []>} : vector<8x32xf32>, vector<32x128xf32>, vector<8x128xf32> -> vector<8x128xf32>
    %cst_18 = arith.constant dense<0.000000e+00> : vector<8x128xf32>
    %19 = tpu.matmul %16, %5, %cst_18 {dimension_numbers = #tpu.dot_dimension_numbers<[1], [0], [0], [1], [0, 0, 1, 1], [], []>} : vector<8x32xf32>, vector<32x128xf32>, vector<8x128xf32> -> vector<8x128xf32>
    %20 = arith.addf %18, %19 : vector<8x128xf32>
    %21 = vector.broadcast %6 : vector<1x128xf32> to vector<8x128xf32>
    %22 = arith.addf %20, %21 : vector<8x128xf32>
    %23 = arith.negf %22 : vector<8x128xf32>
    %24 = math.exp %23 : vector<8x128xf32>
    %cst_19 = arith.constant 1.000000e+00 : f32
    %25 = vector.broadcast %cst_19 : f32 to vector<8x128xf32>
    %26 = arith.addf %25, %24 : vector<8x128xf32>
    %27 = arith.divf %25, %26 : vector<8x128xf32>
    %28 = math.tanh %22 : vector<8x128xf32>
    %29 = arith.select %9, %27, %28 : vector<8x128xi1>, vector<8x128xf32>
    %30 = vector.extract_strided_slice %29 {offsets = [0, 0], sizes = [8, 32], strides = [1, 1]} : vector<8x128xf32> to vector<8x32xf32>
    %31 = vector.extract_strided_slice %29 {offsets = [0, 32], sizes = [8, 32], strides = [1, 1]} : vector<8x128xf32> to vector<8x32xf32>
    %32 = vector.extract_strided_slice %29 {offsets = [0, 64], sizes = [8, 32], strides = [1, 1]} : vector<8x128xf32> to vector<8x32xf32>
    %33 = vector.extract_strided_slice %29 {offsets = [0, 96], sizes = [8, 32], strides = [1, 1]} : vector<8x128xf32> to vector<8x32xf32>
    %34 = arith.mulf %17, %30 : vector<8x32xf32>
    %35 = arith.mulf %31, %33 : vector<8x32xf32>
    %36 = arith.addf %34, %35 : vector<8x32xf32>
    %37 = math.tanh %36 : vector<8x32xf32>
    %38 = arith.mulf %32, %37 : vector<8x32xf32>
    %cst_20 = arith.constant 0.000000e+00 : f32
    %39 = vector.broadcast %cst_20 : f32 to vector<8x1xf32>
    %40 = arith.cmpf ogt, %15, %39 : vector<8x1xf32>
    %41 = vector.shape_cast %40 : vector<8x1xi1> to vector<8x1xi1>
    %42 = vector.broadcast %41 : vector<8x1xi1> to vector<8x32xi1>
    %43 = arith.select %42, %36, %17 : vector<8x32xi1>, vector<8x32xf32>
    %c0_21 = arith.constant 0 : index
    %c0_22 = arith.constant 0 : index
    %44 = vector.load %arg7[%c0_21, %c0_22] : memref<8x32xf32, #tpu.memory_space<vmem>>, vector<8x32xf32>
    tpu.vector_store %arg7[%c0_21, %c0_22], %43 {strides = array<i32>} : memref<8x32xf32, #tpu.memory_space<vmem>>, vector<8x32xf32>,
    %45 = vector.shape_cast %40 : vector<8x1xi1> to vector<8x1xi1>
    %46 = vector.broadcast %45 : vector<8x1xi1> to vector<8x32xi1>
    %47 = arith.select %46, %38, %16 : vector<8x32xi1>, vector<8x32xf32>
    %c0_23 = arith.constant 0 : index
    %c0_24 = arith.constant 0 : index
    %48 = vector.load %arg6[%c0_23, %c0_24] : memref<8x32xf32, #tpu.memory_space<vmem>>, vector<8x32xf32>
    tpu.vector_store %arg6[%c0_23, %c0_24], %47 {strides = array<i32>} : memref<8x32xf32, #tpu.memory_space<vmem>>, vector<8x32xf32>,
    %c1_i32 = arith.constant 1 : i32
    %49 = arith.index_cast %c1_i32 : i32 to index
    %c0_25 = arith.constant 0 : index
    %c0_26 = arith.constant 0 : index
    %50 = vector.load %arg1[%49, %c0_25, %c0_26] : memref<8x8x32xf32, #tpu.memory_space<vmem>>, vector<1x8x32xf32>
    %51 = vector.shape_cast %50 : vector<1x8x32xf32> to vector<8x32xf32>
    %52 = arith.index_cast %c1_i32 : i32 to index
    %c0_27 = arith.constant 0 : index
    %c0_28 = arith.constant 0 : index
    %53 = vector.load %arg2[%52, %c0_27, %c0_28] : memref<8x8x1xf32, #tpu.memory_space<vmem>>, vector<1x8x1xf32>
    %54 = vector.shape_cast %53 : vector<1x8x1xf32> to vector<8x1xf32>
    %c0_29 = arith.constant 0 : index
    %c0_30 = arith.constant 0 : index
    %55 = vector.load %arg6[%c0_29, %c0_30] : memref<8x32xf32, #tpu.memory_space<vmem>>, vector<8x32xf32>
    %c0_31 = arith.constant 0 : index
    %c0_32 = arith.constant 0 : index
    %56 = vector.load %arg7[%c0_31, %c0_32] : memref<8x32xf32, #tpu.memory_space<vmem>>, vector<8x32xf32>
    %cst_33 = arith.constant dense<0.000000e+00> : vector<8x128xf32>
    %57 = tpu.matmul %51, %4, %cst_33 {dimension_numbers = #tpu.dot_dimension_numbers<[1], [0], [0], [1], [0, 0, 1, 1], [], []>} : vector<8x32xf32>, vector<32x128xf32>, vector<8x128xf32> -> vector<8x128xf32>
    %cst_34 = arith.constant dense<0.000000e+00> : vector<8x128xf32>
    %58 = tpu.matmul %55, %5, %cst_34 {dimension_numbers = #tpu.dot_dimension_numbers<[1], [0], [0], [1], [0, 0, 1, 1], [], []>} : vector<8x32xf32>, vector<32x128xf32>, vector<8x128xf32> -> vector<8x128xf32>
    %59 = arith.addf %57, %58 : vector<8x128xf32>
    %60 = vector.broadcast %6 : vector<1x128xf32> to vector<8x128xf32>
    %61 = arith.addf %59, %60 : vector<8x128xf32>
    %62 = arith.negf %61 : vector<8x128xf32>
    %63 = math.exp %62 : vector<8x128xf32>
    %cst_35 = arith.constant 1.000000e+00 : f32
    %64 = vector.broadcast %cst_35 : f32 to vector<8x128xf32>
    %65 = arith.addf %64, %63 : vector<8x128xf32>
    %66 = arith.divf %64, %65 : vector<8x128xf32>
    %67 = math.tanh %61 : vector<8x128xf32>
    %68 = arith.select %9, %66, %67 : vector<8x128xi1>, vector<8x128xf32>
    %69 = vector.extract_strided_slice %68 {offsets = [0, 0], sizes = [8, 32], strides = [1, 1]} : vector<8x128xf32> to vector<8x32xf32>
    %70 = vector.extract_strided_slice %68 {offsets = [0, 32], sizes = [8, 32], strides = [1, 1]} : vector<8x128xf32> to vector<8x32xf32>
    %71 = vector.extract_strided_slice %68 {offsets = [0, 64], sizes = [8, 32], strides = [1, 1]} : vector<8x128xf32> to vector<8x32xf32>
    %72 = vector.extract_strided_slice %68 {offsets = [0, 96], sizes = [8, 32], strides = [1, 1]} : vector<8x128xf32> to vector<8x32xf32>
    %73 = arith.mulf %56, %69 : vector<8x32xf32>
    %74 = arith.mulf %70, %72 : vector<8x32xf32>
    %75 = arith.addf %73, %74 : vector<8x32xf32>
    %76 = math.tanh %75 : vector<8x32xf32>
    %77 = arith.mulf %71, %76 : vector<8x32xf32>
    %cst_36 = arith.constant 0.000000e+00 : f32
    %78 = vector.broadcast %cst_36 : f32 to vector<8x1xf32>
    %79 = arith.cmpf ogt, %54, %78 : vector<8x1xf32>
    %80 = vector.shape_cast %79 : vector<8x1xi1> to vector<8x1xi1>
    %81 = vector.broadcast %80 : vector<8x1xi1> to vector<8x32xi1>
    %82 = arith.select %81, %75, %56 : vector<8x32xi1>, vector<8x32xf32>
    %c0_37 = arith.constant 0 : index
    %c0_38 = arith.constant 0 : index
    %83 = vector.load %arg7[%c0_37, %c0_38] : memref<8x32xf32, #tpu.memory_space<vmem>>, vector<8x32xf32>
    tpu.vector_store %arg7[%c0_37, %c0_38], %82 {strides = array<i32>} : memref<8x32xf32, #tpu.memory_space<vmem>>, vector<8x32xf32>,
    %84 = vector.shape_cast %79 : vector<8x1xi1> to vector<8x1xi1>
    %85 = vector.broadcast %84 : vector<8x1xi1> to vector<8x32xi1>
    %86 = arith.select %85, %77, %55 : vector<8x32xi1>, vector<8x32xf32>
    %c0_39 = arith.constant 0 : index
    %c0_40 = arith.constant 0 : index
    %87 = vector.load %arg6[%c0_39, %c0_40] : memref<8x32xf32, #tpu.memory_space<vmem>>, vector<8x32xf32>
    tpu.vector_store %arg6[%c0_39, %c0_40], %86 {strides = array<i32>} : memref<8x32xf32, #tpu.memory_space<vmem>>, vector<8x32xf32>,
    %c2_i32 = arith.constant 2 : i32
    %88 = arith.index_cast %c2_i32 : i32 to index
    %c0_41 = arith.constant 0 : index
    %c0_42 = arith.constant 0 : index
    %89 = vector.load %arg1[%88, %c0_41, %c0_42] : memref<8x8x32xf32, #tpu.memory_space<vmem>>, vector<1x8x32xf32>
    %90 = vector.shape_cast %89 : vector<1x8x32xf32> to vector<8x32xf32>
    %91 = arith.index_cast %c2_i32 : i32 to index
    %c0_43 = arith.constant 0 : index
    %c0_44 = arith.constant 0 : index
    %92 = vector.load %arg2[%91, %c0_43, %c0_44] : memref<8x8x1xf32, #tpu.memory_space<vmem>>, vector<1x8x1xf32>
    %93 = vector.shape_cast %92 : vector<1x8x1xf32> to vector<8x1xf32>
    %c0_45 = arith.constant 0 : index
    %c0_46 = arith.constant 0 : index
    %94 = vector.load %arg6[%c0_45, %c0_46] : memref<8x32xf32, #tpu.memory_space<vmem>>, vector<8x32xf32>
    %c0_47 = arith.constant 0 : index
    %c0_48 = arith.constant 0 : index
    %95 = vector.load %arg7[%c0_47, %c0_48] : memref<8x32xf32, #tpu.memory_space<vmem>>, vector<8x32xf32>
    %cst_49 = arith.constant dense<0.000000e+00> : vector<8x128xf32>
    %96 = tpu.matmul %90, %4, %cst_49 {dimension_numbers = #tpu.dot_dimension_numbers<[1], [0], [0], [1], [0, 0, 1, 1], [], []>} : vector<8x32xf32>, vector<32x128xf32>, vector<8x128xf32> -> vector<8x128xf32>
    %cst_50 = arith.constant dense<0.000000e+00> : vector<8x128xf32>
    %97 = tpu.matmul %94, %5, %cst_50 {dimension_numbers = #tpu.dot_dimension_numbers<[1], [0], [0], [1], [0, 0, 1, 1], [], []>} : vector<8x32xf32>, vector<32x128xf32>, vector<8x128xf32> -> vector<8x128xf32>
    %98 = arith.addf %96, %97 : vector<8x128xf32>
    %99 = vector.broadcast %6 : vector<1x128xf32> to vector<8x128xf32>
    %100 = arith.addf %98, %99 : vector<8x128xf32>
    %101 = arith.negf %100 : vector<8x128xf32>
    %102 = math.exp %101 : vector<8x128xf32>
    %cst_51 = arith.constant 1.000000e+00 : f32
    %103 = vector.broadcast %cst_51 : f32 to vector<8x128xf32>
    %104 = arith.addf %103, %102 : vector<8x128xf32>
    %105 = arith.divf %103, %104 : vector<8x128xf32>
    %106 = math.tanh %100 : vector<8x128xf32>
    %107 = arith.select %9, %105, %106 : vector<8x128xi1>, vector<8x128xf32>
    %108 = vector.extract_strided_slice %107 {offsets = [0, 0], sizes = [8, 32], strides = [1, 1]} : vector<8x128xf32> to vector<8x32xf32>
    %109 = vector.extract_strided_slice %107 {offsets = [0, 32], sizes = [8, 32], strides = [1, 1]} : vector<8x128xf32> to vector<8x32xf32>
    %110 = vector.extract_strided_slice %107 {offsets = [0, 64], sizes = [8, 32], strides = [1, 1]} : vector<8x128xf32> to vector<8x32xf32>
    %111 = vector.extract_strided_slice %107 {offsets = [0, 96], sizes = [8, 32], strides = [1, 1]} : vector<8x128xf32> to vector<8x32xf32>
    %112 = arith.mulf %95, %108 : vector<8x32xf32>
    %113 = arith.mulf %109, %111 : vector<8x32xf32>
    %114 = arith.addf %112, %113 : vector<8x32xf32>
    %115 = math.tanh %114 : vector<8x32xf32>
    %116 = arith.mulf %110, %115 : vector<8x32xf32>
    %cst_52 = arith.constant 0.000000e+00 : f32
    %117 = vector.broadcast %cst_52 : f32 to vector<8x1xf32>
    %118 = arith.cmpf ogt, %93, %117 : vector<8x1xf32>
    %119 = vector.shape_cast %118 : vector<8x1xi1> to vector<8x1xi1>
    %120 = vector.broadcast %119 : vector<8x1xi1> to vector<8x32xi1>
    %121 = arith.select %120, %114, %95 : vector<8x32xi1>, vector<8x32xf32>
    %c0_53 = arith.constant 0 : index
    %c0_54 = arith.constant 0 : index
    %122 = vector.load %arg7[%c0_53, %c0_54] : memref<8x32xf32, #tpu.memory_space<vmem>>, vector<8x32xf32>
    tpu.vector_store %arg7[%c0_53, %c0_54], %121 {strides = array<i32>} : memref<8x32xf32, #tpu.memory_space<vmem>>, vector<8x32xf32>,
    %123 = vector.shape_cast %118 : vector<8x1xi1> to vector<8x1xi1>
    %124 = vector.broadcast %123 : vector<8x1xi1> to vector<8x32xi1>
    %125 = arith.select %124, %116, %94 : vector<8x32xi1>, vector<8x32xf32>
    %c0_55 = arith.constant 0 : index
    %c0_56 = arith.constant 0 : index
    %126 = vector.load %arg6[%c0_55, %c0_56] : memref<8x32xf32, #tpu.memory_space<vmem>>, vector<8x32xf32>
    tpu.vector_store %arg6[%c0_55, %c0_56], %125 {strides = array<i32>} : memref<8x32xf32, #tpu.memory_space<vmem>>, vector<8x32xf32>,
    %c3_i32 = arith.constant 3 : i32
    %127 = arith.index_cast %c3_i32 : i32 to index
    %c0_57 = arith.constant 0 : index
    %c0_58 = arith.constant 0 : index
    %128 = vector.load %arg1[%127, %c0_57, %c0_58] : memref<8x8x32xf32, #tpu.memory_space<vmem>>, vector<1x8x32xf32>
    %129 = vector.shape_cast %128 : vector<1x8x32xf32> to vector<8x32xf32>
    %130 = arith.index_cast %c3_i32 : i32 to index
    %c0_59 = arith.constant 0 : index
    %c0_60 = arith.constant 0 : index
    %131 = vector.load %arg2[%130, %c0_59, %c0_60] : memref<8x8x1xf32, #tpu.memory_space<vmem>>, vector<1x8x1xf32>
    %132 = vector.shape_cast %131 : vector<1x8x1xf32> to vector<8x1xf32>
    %c0_61 = arith.constant 0 : index
    %c0_62 = arith.constant 0 : index
    %133 = vector.load %arg6[%c0_61, %c0_62] : memref<8x32xf32, #tpu.memory_space<vmem>>, vector<8x32xf32>
    %c0_63 = arith.constant 0 : index
    %c0_64 = arith.constant 0 : index
    %134 = vector.load %arg7[%c0_63, %c0_64] : memref<8x32xf32, #tpu.memory_space<vmem>>, vector<8x32xf32>
    %cst_65 = arith.constant dense<0.000000e+00> : vector<8x128xf32>
    %135 = tpu.matmul %129, %4, %cst_65 {dimension_numbers = #tpu.dot_dimension_numbers<[1], [0], [0], [1], [0, 0, 1, 1], [], []>} : vector<8x32xf32>, vector<32x128xf32>, vector<8x128xf32> -> vector<8x128xf32>
    %cst_66 = arith.constant dense<0.000000e+00> : vector<8x128xf32>
    %136 = tpu.matmul %133, %5, %cst_66 {dimension_numbers = #tpu.dot_dimension_numbers<[1], [0], [0], [1], [0, 0, 1, 1], [], []>} : vector<8x32xf32>, vector<32x128xf32>, vector<8x128xf32> -> vector<8x128xf32>
    %137 = arith.addf %135, %136 : vector<8x128xf32>
    %138 = vector.broadcast %6 : vector<1x128xf32> to vector<8x128xf32>
    %139 = arith.addf %137, %138 : vector<8x128xf32>
    %140 = arith.negf %139 : vector<8x128xf32>
    %141 = math.exp %140 : vector<8x128xf32>
    %cst_67 = arith.constant 1.000000e+00 : f32
    %142 = vector.broadcast %cst_67 : f32 to vector<8x128xf32>
    %143 = arith.addf %142, %141 : vector<8x128xf32>
    %144 = arith.divf %142, %143 : vector<8x128xf32>
    %145 = math.tanh %139 : vector<8x128xf32>
    %146 = arith.select %9, %144, %145 : vector<8x128xi1>, vector<8x128xf32>
    %147 = vector.extract_strided_slice %146 {offsets = [0, 0], sizes = [8, 32], strides = [1, 1]} : vector<8x128xf32> to vector<8x32xf32>
    %148 = vector.extract_strided_slice %146 {offsets = [0, 32], sizes = [8, 32], strides = [1, 1]} : vector<8x128xf32> to vector<8x32xf32>
    %149 = vector.extract_strided_slice %146 {offsets = [0, 64], sizes = [8, 32], strides = [1, 1]} : vector<8x128xf32> to vector<8x32xf32>
    %150 = vector.extract_strided_slice %146 {offsets = [0, 96], sizes = [8, 32], strides = [1, 1]} : vector<8x128xf32> to vector<8x32xf32>
    %151 = arith.mulf %134, %147 : vector<8x32xf32>
    %152 = arith.mulf %148, %150 : vector<8x32xf32>
    %153 = arith.addf %151, %152 : vector<8x32xf32>
    %154 = math.tanh %153 : vector<8x32xf32>
    %155 = arith.mulf %149, %154 : vector<8x32xf32>
    %cst_68 = arith.constant 0.000000e+00 : f32
    %156 = vector.broadcast %cst_68 : f32 to vector<8x1xf32>
    %157 = arith.cmpf ogt, %132, %156 : vector<8x1xf32>
    %158 = vector.shape_cast %157 : vector<8x1xi1> to vector<8x1xi1>
    %159 = vector.broadcast %158 : vector<8x1xi1> to vector<8x32xi1>
    %160 = arith.select %159, %153, %134 : vector<8x32xi1>, vector<8x32xf32>
    %c0_69 = arith.constant 0 : index
    %c0_70 = arith.constant 0 : index
    %161 = vector.load %arg7[%c0_69, %c0_70] : memref<8x32xf32, #tpu.memory_space<vmem>>, vector<8x32xf32>
    tpu.vector_store %arg7[%c0_69, %c0_70], %160 {strides = array<i32>} : memref<8x32xf32, #tpu.memory_space<vmem>>, vector<8x32xf32>,
    %162 = vector.shape_cast %157 : vector<8x1xi1> to vector<8x1xi1>
    %163 = vector.broadcast %162 : vector<8x1xi1> to vector<8x32xi1>
    %164 = arith.select %163, %155, %133 : vector<8x32xi1>, vector<8x32xf32>
    %c0_71 = arith.constant 0 : index
    %c0_72 = arith.constant 0 : index
    %165 = vector.load %arg6[%c0_71, %c0_72] : memref<8x32xf32, #tpu.memory_space<vmem>>, vector<8x32xf32>
    tpu.vector_store %arg6[%c0_71, %c0_72], %164 {strides = array<i32>} : memref<8x32xf32, #tpu.memory_space<vmem>>, vector<8x32xf32>,
    %c4_i32 = arith.constant 4 : i32
    %166 = arith.index_cast %c4_i32 : i32 to index
    %c0_73 = arith.constant 0 : index
    %c0_74 = arith.constant 0 : index
    %167 = vector.load %arg1[%166, %c0_73, %c0_74] : memref<8x8x32xf32, #tpu.memory_space<vmem>>, vector<1x8x32xf32>
    %168 = vector.shape_cast %167 : vector<1x8x32xf32> to vector<8x32xf32>
    %169 = arith.index_cast %c4_i32 : i32 to index
    %c0_75 = arith.constant 0 : index
    %c0_76 = arith.constant 0 : index
    %170 = vector.load %arg2[%169, %c0_75, %c0_76] : memref<8x8x1xf32, #tpu.memory_space<vmem>>, vector<1x8x1xf32>
    %171 = vector.shape_cast %170 : vector<1x8x1xf32> to vector<8x1xf32>
    %c0_77 = arith.constant 0 : index
    %c0_78 = arith.constant 0 : index
    %172 = vector.load %arg6[%c0_77, %c0_78] : memref<8x32xf32, #tpu.memory_space<vmem>>, vector<8x32xf32>
    %c0_79 = arith.constant 0 : index
    %c0_80 = arith.constant 0 : index
    %173 = vector.load %arg7[%c0_79, %c0_80] : memref<8x32xf32, #tpu.memory_space<vmem>>, vector<8x32xf32>
    %cst_81 = arith.constant dense<0.000000e+00> : vector<8x128xf32>
    %174 = tpu.matmul %168, %4, %cst_81 {dimension_numbers = #tpu.dot_dimension_numbers<[1], [0], [0], [1], [0, 0, 1, 1], [], []>} : vector<8x32xf32>, vector<32x128xf32>, vector<8x128xf32> -> vector<8x128xf32>
    %cst_82 = arith.constant dense<0.000000e+00> : vector<8x128xf32>
    %175 = tpu.matmul %172, %5, %cst_82 {dimension_numbers = #tpu.dot_dimension_numbers<[1], [0], [0], [1], [0, 0, 1, 1], [], []>} : vector<8x32xf32>, vector<32x128xf32>, vector<8x128xf32> -> vector<8x128xf32>
    %176 = arith.addf %174, %175 : vector<8x128xf32>
    %177 = vector.broadcast %6 : vector<1x128xf32> to vector<8x128xf32>
    %178 = arith.addf %176, %177 : vector<8x128xf32>
    %179 = arith.negf %178 : vector<8x128xf32>
    %180 = math.exp %179 : vector<8x128xf32>
    %cst_83 = arith.constant 1.000000e+00 : f32
    %181 = vector.broadcast %cst_83 : f32 to vector<8x128xf32>
    %182 = arith.addf %181, %180 : vector<8x128xf32>
    %183 = arith.divf %181, %182 : vector<8x128xf32>
    %184 = math.tanh %178 : vector<8x128xf32>
    %185 = arith.select %9, %183, %184 : vector<8x128xi1>, vector<8x128xf32>
    %186 = vector.extract_strided_slice %185 {offsets = [0, 0], sizes = [8, 32], strides = [1, 1]} : vector<8x128xf32> to vector<8x32xf32>
    %187 = vector.extract_strided_slice %185 {offsets = [0, 32], sizes = [8, 32], strides = [1, 1]} : vector<8x128xf32> to vector<8x32xf32>
    %188 = vector.extract_strided_slice %185 {offsets = [0, 64], sizes = [8, 32], strides = [1, 1]} : vector<8x128xf32> to vector<8x32xf32>
    %189 = vector.extract_strided_slice %185 {offsets = [0, 96], sizes = [8, 32], strides = [1, 1]} : vector<8x128xf32> to vector<8x32xf32>
    %190 = arith.mulf %173, %186 : vector<8x32xf32>
    %191 = arith.mulf %187, %189 : vector<8x32xf32>
    %192 = arith.addf %190, %191 : vector<8x32xf32>
    %193 = math.tanh %192 : vector<8x32xf32>
    %194 = arith.mulf %188, %193 : vector<8x32xf32>
    %cst_84 = arith.constant 0.000000e+00 : f32
    %195 = vector.broadcast %cst_84 : f32 to vector<8x1xf32>
    %196 = arith.cmpf ogt, %171, %195 : vector<8x1xf32>
    %197 = vector.shape_cast %196 : vector<8x1xi1> to vector<8x1xi1>
    %198 = vector.broadcast %197 : vector<8x1xi1> to vector<8x32xi1>
    %199 = arith.select %198, %192, %173 : vector<8x32xi1>, vector<8x32xf32>
    %c0_85 = arith.constant 0 : index
    %c0_86 = arith.constant 0 : index
    %200 = vector.load %arg7[%c0_85, %c0_86] : memref<8x32xf32, #tpu.memory_space<vmem>>, vector<8x32xf32>
    tpu.vector_store %arg7[%c0_85, %c0_86], %199 {strides = array<i32>} : memref<8x32xf32, #tpu.memory_space<vmem>>, vector<8x32xf32>,
    %201 = vector.shape_cast %196 : vector<8x1xi1> to vector<8x1xi1>
    %202 = vector.broadcast %201 : vector<8x1xi1> to vector<8x32xi1>
    %203 = arith.select %202, %194, %172 : vector<8x32xi1>, vector<8x32xf32>
    %c0_87 = arith.constant 0 : index
    %c0_88 = arith.constant 0 : index
    %204 = vector.load %arg6[%c0_87, %c0_88] : memref<8x32xf32, #tpu.memory_space<vmem>>, vector<8x32xf32>
    tpu.vector_store %arg6[%c0_87, %c0_88], %203 {strides = array<i32>} : memref<8x32xf32, #tpu.memory_space<vmem>>, vector<8x32xf32>,
    %c5_i32 = arith.constant 5 : i32
    %205 = arith.index_cast %c5_i32 : i32 to index
    %c0_89 = arith.constant 0 : index
    %c0_90 = arith.constant 0 : index
    %206 = vector.load %arg1[%205, %c0_89, %c0_90] : memref<8x8x32xf32, #tpu.memory_space<vmem>>, vector<1x8x32xf32>
    %207 = vector.shape_cast %206 : vector<1x8x32xf32> to vector<8x32xf32>
    %208 = arith.index_cast %c5_i32 : i32 to index
    %c0_91 = arith.constant 0 : index
    %c0_92 = arith.constant 0 : index
    %209 = vector.load %arg2[%208, %c0_91, %c0_92] : memref<8x8x1xf32, #tpu.memory_space<vmem>>, vector<1x8x1xf32>
    %210 = vector.shape_cast %209 : vector<1x8x1xf32> to vector<8x1xf32>
    %c0_93 = arith.constant 0 : index
    %c0_94 = arith.constant 0 : index
    %211 = vector.load %arg6[%c0_93, %c0_94] : memref<8x32xf32, #tpu.memory_space<vmem>>, vector<8x32xf32>
    %c0_95 = arith.constant 0 : index
    %c0_96 = arith.constant 0 : index
    %212 = vector.load %arg7[%c0_95, %c0_96] : memref<8x32xf32, #tpu.memory_space<vmem>>, vector<8x32xf32>
    %cst_97 = arith.constant dense<0.000000e+00> : vector<8x128xf32>
    %213 = tpu.matmul %207, %4, %cst_97 {dimension_numbers = #tpu.dot_dimension_numbers<[1], [0], [0], [1], [0, 0, 1, 1], [], []>} : vector<8x32xf32>, vector<32x128xf32>, vector<8x128xf32> -> vector<8x128xf32>
    %cst_98 = arith.constant dense<0.000000e+00> : vector<8x128xf32>
    %214 = tpu.matmul %211, %5, %cst_98 {dimension_numbers = #tpu.dot_dimension_numbers<[1], [0], [0], [1], [0, 0, 1, 1], [], []>} : vector<8x32xf32>, vector<32x128xf32>, vector<8x128xf32> -> vector<8x128xf32>
    %215 = arith.addf %213, %214 : vector<8x128xf32>
    %216 = vector.broadcast %6 : vector<1x128xf32> to vector<8x128xf32>
    %217 = arith.addf %215, %216 : vector<8x128xf32>
    %218 = arith.negf %217 : vector<8x128xf32>
    %219 = math.exp %218 : vector<8x128xf32>
    %cst_99 = arith.constant 1.000000e+00 : f32
    %220 = vector.broadcast %cst_99 : f32 to vector<8x128xf32>
    %221 = arith.addf %220, %219 : vector<8x128xf32>
    %222 = arith.divf %220, %221 : vector<8x128xf32>
    %223 = math.tanh %217 : vector<8x128xf32>
    %224 = arith.select %9, %222, %223 : vector<8x128xi1>, vector<8x128xf32>
    %225 = vector.extract_strided_slice %224 {offsets = [0, 0], sizes = [8, 32], strides = [1, 1]} : vector<8x128xf32> to vector<8x32xf32>
    %226 = vector.extract_strided_slice %224 {offsets = [0, 32], sizes = [8, 32], strides = [1, 1]} : vector<8x128xf32> to vector<8x32xf32>
    %227 = vector.extract_strided_slice %224 {offsets = [0, 64], sizes = [8, 32], strides = [1, 1]} : vector<8x128xf32> to vector<8x32xf32>
    %228 = vector.extract_strided_slice %224 {offsets = [0, 96], sizes = [8, 32], strides = [1, 1]} : vector<8x128xf32> to vector<8x32xf32>
    %229 = arith.mulf %212, %225 : vector<8x32xf32>
    %230 = arith.mulf %226, %228 : vector<8x32xf32>
    %231 = arith.addf %229, %230 : vector<8x32xf32>
    %232 = math.tanh %231 : vector<8x32xf32>
    %233 = arith.mulf %227, %232 : vector<8x32xf32>
    %cst_100 = arith.constant 0.000000e+00 : f32
    %234 = vector.broadcast %cst_100 : f32 to vector<8x1xf32>
    %235 = arith.cmpf ogt, %210, %234 : vector<8x1xf32>
    %236 = vector.shape_cast %235 : vector<8x1xi1> to vector<8x1xi1>
    %237 = vector.broadcast %236 : vector<8x1xi1> to vector<8x32xi1>
    %238 = arith.select %237, %231, %212 : vector<8x32xi1>, vector<8x32xf32>
    %c0_101 = arith.constant 0 : index
    %c0_102 = arith.constant 0 : index
    %239 = vector.load %arg7[%c0_101, %c0_102] : memref<8x32xf32, #tpu.memory_space<vmem>>, vector<8x32xf32>
    tpu.vector_store %arg7[%c0_101, %c0_102], %238 {strides = array<i32>} : memref<8x32xf32, #tpu.memory_space<vmem>>, vector<8x32xf32>,
    %240 = vector.shape_cast %235 : vector<8x1xi1> to vector<8x1xi1>
    %241 = vector.broadcast %240 : vector<8x1xi1> to vector<8x32xi1>
    %242 = arith.select %241, %233, %211 : vector<8x32xi1>, vector<8x32xf32>
    %c0_103 = arith.constant 0 : index
    %c0_104 = arith.constant 0 : index
    %243 = vector.load %arg6[%c0_103, %c0_104] : memref<8x32xf32, #tpu.memory_space<vmem>>, vector<8x32xf32>
    tpu.vector_store %arg6[%c0_103, %c0_104], %242 {strides = array<i32>} : memref<8x32xf32, #tpu.memory_space<vmem>>, vector<8x32xf32>,
    %c6_i32 = arith.constant 6 : i32
    %244 = arith.index_cast %c6_i32 : i32 to index
    %c0_105 = arith.constant 0 : index
    %c0_106 = arith.constant 0 : index
    %245 = vector.load %arg1[%244, %c0_105, %c0_106] : memref<8x8x32xf32, #tpu.memory_space<vmem>>, vector<1x8x32xf32>
    %246 = vector.shape_cast %245 : vector<1x8x32xf32> to vector<8x32xf32>
    %247 = arith.index_cast %c6_i32 : i32 to index
    %c0_107 = arith.constant 0 : index
    %c0_108 = arith.constant 0 : index
    %248 = vector.load %arg2[%247, %c0_107, %c0_108] : memref<8x8x1xf32, #tpu.memory_space<vmem>>, vector<1x8x1xf32>
    %249 = vector.shape_cast %248 : vector<1x8x1xf32> to vector<8x1xf32>
    %c0_109 = arith.constant 0 : index
    %c0_110 = arith.constant 0 : index
    %250 = vector.load %arg6[%c0_109, %c0_110] : memref<8x32xf32, #tpu.memory_space<vmem>>, vector<8x32xf32>
    %c0_111 = arith.constant 0 : index
    %c0_112 = arith.constant 0 : index
    %251 = vector.load %arg7[%c0_111, %c0_112] : memref<8x32xf32, #tpu.memory_space<vmem>>, vector<8x32xf32>
    %cst_113 = arith.constant dense<0.000000e+00> : vector<8x128xf32>
    %252 = tpu.matmul %246, %4, %cst_113 {dimension_numbers = #tpu.dot_dimension_numbers<[1], [0], [0], [1], [0, 0, 1, 1], [], []>} : vector<8x32xf32>, vector<32x128xf32>, vector<8x128xf32> -> vector<8x128xf32>
    %cst_114 = arith.constant dense<0.000000e+00> : vector<8x128xf32>
    %253 = tpu.matmul %250, %5, %cst_114 {dimension_numbers = #tpu.dot_dimension_numbers<[1], [0], [0], [1], [0, 0, 1, 1], [], []>} : vector<8x32xf32>, vector<32x128xf32>, vector<8x128xf32> -> vector<8x128xf32>
    %254 = arith.addf %252, %253 : vector<8x128xf32>
    %255 = vector.broadcast %6 : vector<1x128xf32> to vector<8x128xf32>
    %256 = arith.addf %254, %255 : vector<8x128xf32>
    %257 = arith.negf %256 : vector<8x128xf32>
    %258 = math.exp %257 : vector<8x128xf32>
    %cst_115 = arith.constant 1.000000e+00 : f32
    %259 = vector.broadcast %cst_115 : f32 to vector<8x128xf32>
    %260 = arith.addf %259, %258 : vector<8x128xf32>
    %261 = arith.divf %259, %260 : vector<8x128xf32>
    %262 = math.tanh %256 : vector<8x128xf32>
    %263 = arith.select %9, %261, %262 : vector<8x128xi1>, vector<8x128xf32>
    %264 = vector.extract_strided_slice %263 {offsets = [0, 0], sizes = [8, 32], strides = [1, 1]} : vector<8x128xf32> to vector<8x32xf32>
    %265 = vector.extract_strided_slice %263 {offsets = [0, 32], sizes = [8, 32], strides = [1, 1]} : vector<8x128xf32> to vector<8x32xf32>
    %266 = vector.extract_strided_slice %263 {offsets = [0, 64], sizes = [8, 32], strides = [1, 1]} : vector<8x128xf32> to vector<8x32xf32>
    %267 = vector.extract_strided_slice %263 {offsets = [0, 96], sizes = [8, 32], strides = [1, 1]} : vector<8x128xf32> to vector<8x32xf32>
    %268 = arith.mulf %251, %264 : vector<8x32xf32>
    %269 = arith.mulf %265, %267 : vector<8x32xf32>
    %270 = arith.addf %268, %269 : vector<8x32xf32>
    %271 = math.tanh %270 : vector<8x32xf32>
    %272 = arith.mulf %266, %271 : vector<8x32xf32>
    %cst_116 = arith.constant 0.000000e+00 : f32
    %273 = vector.broadcast %cst_116 : f32 to vector<8x1xf32>
    %274 = arith.cmpf ogt, %249, %273 : vector<8x1xf32>
    %275 = vector.shape_cast %274 : vector<8x1xi1> to vector<8x1xi1>
    %276 = vector.broadcast %275 : vector<8x1xi1> to vector<8x32xi1>
    %277 = arith.select %276, %270, %251 : vector<8x32xi1>, vector<8x32xf32>
    %c0_117 = arith.constant 0 : index
    %c0_118 = arith.constant 0 : index
    %278 = vector.load %arg7[%c0_117, %c0_118] : memref<8x32xf32, #tpu.memory_space<vmem>>, vector<8x32xf32>
    tpu.vector_store %arg7[%c0_117, %c0_118], %277 {strides = array<i32>} : memref<8x32xf32, #tpu.memory_space<vmem>>, vector<8x32xf32>,
    %279 = vector.shape_cast %274 : vector<8x1xi1> to vector<8x1xi1>
    %280 = vector.broadcast %279 : vector<8x1xi1> to vector<8x32xi1>
    %281 = arith.select %280, %272, %250 : vector<8x32xi1>, vector<8x32xf32>
    %c0_119 = arith.constant 0 : index
    %c0_120 = arith.constant 0 : index
    %282 = vector.load %arg6[%c0_119, %c0_120] : memref<8x32xf32, #tpu.memory_space<vmem>>, vector<8x32xf32>
    tpu.vector_store %arg6[%c0_119, %c0_120], %281 {strides = array<i32>} : memref<8x32xf32, #tpu.memory_space<vmem>>, vector<8x32xf32>,
    %c7_i32 = arith.constant 7 : i32
    %283 = arith.index_cast %c7_i32 : i32 to index
    %c0_121 = arith.constant 0 : index
    %c0_122 = arith.constant 0 : index
    %284 = vector.load %arg1[%283, %c0_121, %c0_122] : memref<8x8x32xf32, #tpu.memory_space<vmem>>, vector<1x8x32xf32>
    %285 = vector.shape_cast %284 : vector<1x8x32xf32> to vector<8x32xf32>
    %286 = arith.index_cast %c7_i32 : i32 to index
    %c0_123 = arith.constant 0 : index
    %c0_124 = arith.constant 0 : index
    %287 = vector.load %arg2[%286, %c0_123, %c0_124] : memref<8x8x1xf32, #tpu.memory_space<vmem>>, vector<1x8x1xf32>
    %288 = vector.shape_cast %287 : vector<1x8x1xf32> to vector<8x1xf32>
    %c0_125 = arith.constant 0 : index
    %c0_126 = arith.constant 0 : index
    %289 = vector.load %arg6[%c0_125, %c0_126] : memref<8x32xf32, #tpu.memory_space<vmem>>, vector<8x32xf32>
    %c0_127 = arith.constant 0 : index
    %c0_128 = arith.constant 0 : index
    %290 = vector.load %arg7[%c0_127, %c0_128] : memref<8x32xf32, #tpu.memory_space<vmem>>, vector<8x32xf32>
    %cst_129 = arith.constant dense<0.000000e+00> : vector<8x128xf32>
    %291 = tpu.matmul %285, %4, %cst_129 {dimension_numbers = #tpu.dot_dimension_numbers<[1], [0], [0], [1], [0, 0, 1, 1], [], []>} : vector<8x32xf32>, vector<32x128xf32>, vector<8x128xf32> -> vector<8x128xf32>
    %cst_130 = arith.constant dense<0.000000e+00> : vector<8x128xf32>
    %292 = tpu.matmul %289, %5, %cst_130 {dimension_numbers = #tpu.dot_dimension_numbers<[1], [0], [0], [1], [0, 0, 1, 1], [], []>} : vector<8x32xf32>, vector<32x128xf32>, vector<8x128xf32> -> vector<8x128xf32>
    %293 = arith.addf %291, %292 : vector<8x128xf32>
    %294 = vector.broadcast %6 : vector<1x128xf32> to vector<8x128xf32>
    %295 = arith.addf %293, %294 : vector<8x128xf32>
    %296 = arith.negf %295 : vector<8x128xf32>
    %297 = math.exp %296 : vector<8x128xf32>
    %cst_131 = arith.constant 1.000000e+00 : f32
    %298 = vector.broadcast %cst_131 : f32 to vector<8x128xf32>
    %299 = arith.addf %298, %297 : vector<8x128xf32>
    %300 = arith.divf %298, %299 : vector<8x128xf32>
    %301 = math.tanh %295 : vector<8x128xf32>
    %302 = arith.select %9, %300, %301 : vector<8x128xi1>, vector<8x128xf32>
    %303 = vector.extract_strided_slice %302 {offsets = [0, 0], sizes = [8, 32], strides = [1, 1]} : vector<8x128xf32> to vector<8x32xf32>
    %304 = vector.extract_strided_slice %302 {offsets = [0, 32], sizes = [8, 32], strides = [1, 1]} : vector<8x128xf32> to vector<8x32xf32>
    %305 = vector.extract_strided_slice %302 {offsets = [0, 64], sizes = [8, 32], strides = [1, 1]} : vector<8x128xf32> to vector<8x32xf32>
    %306 = vector.extract_strided_slice %302 {offsets = [0, 96], sizes = [8, 32], strides = [1, 1]} : vector<8x128xf32> to vector<8x32xf32>
    %307 = arith.mulf %290, %303 : vector<8x32xf32>
    %308 = arith.mulf %304, %306 : vector<8x32xf32>
    %309 = arith.addf %307, %308 : vector<8x32xf32>
    %310 = math.tanh %309 : vector<8x32xf32>
    %311 = arith.mulf %305, %310 : vector<8x32xf32>
    %cst_132 = arith.constant 0.000000e+00 : f32
    %312 = vector.broadcast %cst_132 : f32 to vector<8x1xf32>
    %313 = arith.cmpf ogt, %288, %312 : vector<8x1xf32>
    %314 = vector.shape_cast %313 : vector<8x1xi1> to vector<8x1xi1>
    %315 = vector.broadcast %314 : vector<8x1xi1> to vector<8x32xi1>
    %316 = arith.select %315, %309, %290 : vector<8x32xi1>, vector<8x32xf32>
    %c0_133 = arith.constant 0 : index
    %c0_134 = arith.constant 0 : index
    %317 = vector.load %arg7[%c0_133, %c0_134] : memref<8x32xf32, #tpu.memory_space<vmem>>, vector<8x32xf32>
    tpu.vector_store %arg7[%c0_133, %c0_134], %316 {strides = array<i32>} : memref<8x32xf32, #tpu.memory_space<vmem>>, vector<8x32xf32>,
    %318 = vector.shape_cast %313 : vector<8x1xi1> to vector<8x1xi1>
    %319 = vector.broadcast %318 : vector<8x1xi1> to vector<8x32xi1>
    %320 = arith.select %319, %311, %289 : vector<8x32xi1>, vector<8x32xf32>
    %c0_135 = arith.constant 0 : index
    %c0_136 = arith.constant 0 : index
    %321 = vector.load %arg6[%c0_135, %c0_136] : memref<8x32xf32, #tpu.memory_space<vmem>>, vector<8x32xf32>
    tpu.vector_store %arg6[%c0_135, %c0_136], %320 {strides = array<i32>} : memref<8x32xf32, #tpu.memory_space<vmem>>, vector<8x32xf32>,
    %c8_i32 = arith.constant 8 : i32
    %c0_137 = arith.constant 0 : index
    %c0_138 = arith.constant 0 : index
    %322 = vector.load %arg6[%c0_137, %c0_138] : memref<8x32xf32, #tpu.memory_space<vmem>>, vector<8x32xf32>
    %c0_139 = arith.constant 0 : index
    %c0_140 = arith.constant 0 : index
    %323 = vector.load %arg5[%c0_139, %c0_140] : memref<8x32xf32, #tpu.memory_space<vmem>>, vector<8x32xf32>
    tpu.vector_store %arg5[%c0_139, %c0_140], %322 {strides = array<i32>} : memref<8x32xf32, #tpu.memory_space<vmem>>, vector<8x32xf32>,
    return
  }
  func.func @transform_0(%arg0: i32) -> (i32, i32, i32) {
    %c0_i32 = arith.constant 0 : i32
    %c0_i32_0 = arith.constant 0 : i32
    %c0_i32_1 = arith.constant 0 : i32
    return %c0_i32, %arg0, %c0_i32_0 : i32, i32, i32
  }
  func.func @transform_1(%arg0: i32) -> (i32, i32, i32) {
    %c0_i32 = arith.constant 0 : i32
    %c0_i32_0 = arith.constant 0 : i32
    %c0_i32_1 = arith.constant 0 : i32
    return %c0_i32, %arg0, %c0_i32_0 : i32, i32, i32
  }
  func.func @transform_2(%arg0: i32) -> (i32, i32) {
    %c0_i32 = arith.constant 0 : i32
    %c0_i32_0 = arith.constant 0 : i32
    %c0_i32_1 = arith.constant 0 : i32
    return %c0_i32, %c0_i32_0 : i32, i32
  }
  func.func @transform_3(%arg0: i32) -> (i32, i32) {
    %c0_i32 = arith.constant 0 : i32
    %c0_i32_0 = arith.constant 0 : i32
    %c0_i32_1 = arith.constant 0 : i32
    return %c0_i32, %c0_i32_0 : i32, i32
  }
  func.func @transform_4(%arg0: i32) -> (i32, i32) {
    %c0_i32 = arith.constant 0 : i32
    %c0_i32_0 = arith.constant 0 : i32
    return %arg0, %c0_i32 : i32, i32
  }
}

</mosaic_0001>

<bundles_post_ra>
// kernel: tpu_custom_call.1
= control target key start
LH: loop header
LB: loop body
LE: loop exit
PB: predicated region body
PF: predicated region fallthrough
CT: control target
= control target key end

     0   :  { %9 = vsyncpa [#allocation5], 0  ;;  %s2483_s0 = inlined_call_operand.vmem [shape: f32[8,8,32], index: 0, kind: input, shape index: {}]   ;;  %s2484_s1 = inlined_call_operand.vmem [shape: f32[8,8,1], index: 1, kind: input, shape index: {}]   ;;  %s2485_s2 = inlined_call_operand.hbm [shape: f32[64,128], index: 2, kind: input, shape index: {}]   ;;  %s2486_s3 = inlined_call_operand.vmem [shape: f32[1,128], index: 3, kind: input, shape index: {}]   ;;  %s2487_s4 = inlined_call_operand.hbm [shape: f32[8,32], index: 4, kind: output, shape index: {}]  }
   0x1   :  { %10 = vsyncpa [#allocation6], 0  ;;  %s2143_s15 = smov [#allocation4]   ;;  %s2095_s19 = scalar_lea.hbm %s2485_s2, 1024 }
   0x2   :  { %s20_s16 = sshll.u32 %s2143_s15, 4  ;;  %p2096_p0 = scmp.ne.s32.totalorder %s2485_s2, %s2095_s19  ;;  %s21_s16 = int_to_ptr.vmem [resolvable:$true] %s20_s16 }
   0x3   :  { %p2099_p1 = scmp.lt.u32.totalorder %s2095_s19, %s2485_s2 }
   0x5   :  { %p2101_p2 = pnand %p2099_p1, %p2096_p0 }
   0x7   :  { %2104 = shalt.err (!%p2101_p2)
}
   0x8   :  { %s2105_s24 = scalar_lea.vmem %s21_s16, 1024  ;;  %p2110_p4 = scmp.lt.s32.totalorder %s21_s16, %s21_s16 }
   0x9   :  { %p2106_p3 = scmp.ne.s32.totalorder %s21_s16, %s2105_s24  ;;  %p2111_p5 = scmp.lt.s32.totalorder %s2105_s24, %s2105_s24 }
   0xb   :  { %p2112_p6 = por %p2111_p5, %p2110_p4 }
   0xd   :  { %p2113_p7 = pnand %p2112_p6, %p2106_p3 }
   0xf   :  { %2116 = shalt.err (!%p2113_p7)
}
  0x10   :  { %s2144_s25 = smov 128   ;;  %s2145_s26 = smov 8  }
  0x11   :  { %26 = dma.hbm_to_vmem [thread:$0]  %s2485_s2, 1024, %s21_s16, [#allocation5], %s2144_s25, %s2144_s25, %s2145_s26  }
  0x12   :  { %2139 = dma.done.wait [#allocation5], 1024  }
  0x13   :  { %2140 = vsyncadd [#allocation5], 4294966272  ;;  %vm32_vm0 = vcmask 261120   ;;  %v2146_v0 = vmov 0.0|0.0   ;;  %v2147_v1 = vmov 0.0   ;;  %vm2148_vm1 = vmmov 0  }
  0x14   :  { %1923 = vmatprep.subr.bf16.mxu0 %v2146_v0  ;;  %1929 = vmatprep.subr.bf16.mxu1 %v2146_v0  ;;  %33 = vst.msk [vmem:[#allocation2] sm:$0xff] %vm32_vm0, %v2147_v1  ;;  %34 = vst.msk [vmem:[#allocation3] sm:$0xff] %vm32_vm0, %v2147_v1  ;;  %v39_v2 = vld [vmem:[#allocation4 + $0x20] sm:$0xff]  ;;  %v40_v3 = vld [vmem:[#allocation4 + $0x28] sm:$0xff]  ;;  %v2149_v17 = vmov 0   ;;  %v44_v29 = vlaneseq  ;;  %s2151_s8 = smov 96  }
  0x15   :  { %1755 = vmatprep.mubr.msk.f32.mxu0 %vm2148_vm1, %v2147_v1  ;;  %1766 = vmatprep.mubr.msk.f32.mxu1 %vm2148_vm1, %v2147_v1  ;;  %v35_v4 = vld [vmem:[#allocation4] sm:$0xff]  ;;  %v2200_v5 = vpack.c.bf16 %v40_v3, %v39_v2  ;;  %v36_v6 = vld [vmem:[#allocation4 + $0x8] sm:$0xff]  ;;  %v41_v7 = vld [vmem:[#allocation4 + $0x30] sm:$0xff] }
  0x16   :  { %v42_v8 = vld [vmem:[#allocation4 + $0x38] sm:$0xff]  ;;  %v2202_v9 = vpack.c.bf16 %v36_v6, %v35_v4  ;;  %v37_v10 = vld [vmem:[#allocation4 + $0x10] sm:$0xff]  ;;  %2029 = vset.pattern.permute.xlu1 %v2149_v17  ;;  %2030 = vset.pattern.permute.xlu0 %v2149_v17  ;;  %v2245_v30 = vand.u32 127, %v44_v29 }
  0x17   :  { %v38_v11 = vld [vmem:[#allocation4 + $0x18] sm:$0xff]  ;;  %1925 = vmatpush3.bf16.msra.mxu0 %v2200_v5  ;;  %v2205_v12 = vpack.c.bf16 %v42_v8, %v41_v7  ;;  %v47_v15 = vld [vmem:[%s2483_s0] sm:$0xff] }
  0x18   :  { %1931 = vmatpush3.bf16.msra.mxu1 %v2202_v9  ;;  %1926 = vmatprep.subr.bf16.mxu0 %v2146_v0  ;;  %v2209_v13 = vpack.c.bf16 %v38_v11, %v37_v10  ;;  %v48_v16 = vld [vmem:[%s2484_s1] sm:$0xff]  ;;  %vm46_vm3 = vcmp.lt.s32.totalorder %v2245_v30, 96  ;;  %v1632_v43 = vld [vmem:[%s2483_s0 + $0x8] sm:$0xff] }
  0x19   :  { %1932 = vmatprep.subr.bf16.mxu1 %v2146_v0  ;;  %vm229_vm2 = vcmp.gt.f32.partialorder %v48_v16, 0.0  ;;  %v2242_v20 = vld [vmem:[%s2486_s3] ss:$0 sm:$0xff]  ;;  %s2150_s3 = smov 64   ;;  %v1633_v59 = vld [vmem:[%s2484_s1 + $0x8] sm:$0xff] }
  0x1a   :  { %v230_v18 = vsel %vm229_vm2, 1, %v2149_v17  ;;  %vm424_vm5 = vcmp.gt.f32.partialorder %v1633_v59, 0.0 }
  0x1b   :  { %1928 = vmatpush3.bf16.msra.mxu0 %v2205_v12  ;;  %v49_v14 = vld [vmem:[#allocation2] sm:$0xff]  ;;  %232 = vperm.xlu1 %2029, %v230_v18   ;;  %v50_v36 = vld [vmem:[#allocation3] sm:$0xff]  ;;  %v425_v63 = vsel %vm424_vm5, 1, %v2149_v17 }
  0x1c   :  { %1934 = vmatpush3.bf16.msra.mxu1 %v2209_v13  ;;  %1935 = vmatprep.subr.bf16.mxu0 %v2146_v0 }
  0x1d   :  { %1941 = vmatprep.subr.bf16.mxu1 %v2146_v0 }
  0x1e   :  { %1756 = vmatmul.mubr.msk.f32.vlgmr.msra.gmra.mrb[0].mxu0 %vm32_vm0, %v49_v14 }
  0x1f   :  { %1767 = vmatmul.mubr.msk.f32.vlgmr.msra.gmra.mrb[0].mxu1 %vm32_vm0, %v47_v15  ;;  %1937 = vmatpush3.bf16.msra.mxu0 %v2200_v5  ;;  %v1637_v15 = vld [vmem:[%s2483_s0 + $0x10] sm:$0xff] }
  0x20   :  { %1943 = vmatpush3.bf16.msra.mxu1 %v2202_v9  ;;  %1938 = vmatprep.subr.bf16.mxu0 %v2146_v0 }
  0x21   :  { %1944 = vmatprep.subr.bf16.mxu1 %v2146_v0  ;;  %1788 = vmatprep.mubr.msk.f32.mxu1 %vm2148_vm1, %v2147_v1 }
  0x22   :  { %1777 = vmatprep.mubr.msk.f32.mxu0 %vm2148_vm1, %v2147_v1 }
  0x23   :  { %1940 = vmatpush3.bf16.msra.mxu0 %v2205_v12 }
  0x24   :  { %1946 = vmatpush3.bf16.msra.mxu1 %v2209_v13  ;;  %1947 = vmatprep.subr.bf16.mxu0 %v2146_v0 }
  0x25   :  { %1953 = vmatprep.subr.bf16.mxu1 %v2146_v0 }
  0x27   :  { %1789 = vmatmul.mubr.msk.f32.vlgmr.msra.gmra.mrb[2].mxu1 %vm32_vm0, %v1632_v43 }
  0x28   :  { %1955 = vmatpush3.bf16.msra.mxu1 %v2202_v9  ;;  %1810 = vmatprep.mubr.msk.f32.mxu1 %vm2148_vm1, %v2147_v1 }
  0x29   :  { %1956 = vmatprep.subr.bf16.mxu1 %v2146_v0 }
  0x2c   :  { %1958 = vmatpush3.bf16.msra.mxu1 %v2209_v13 }
  0x2d   :  { %1965 = vmatprep.subr.bf16.mxu1 %v2146_v0 }
  0x2f   :  { %1811 = vmatmul.mubr.msk.f32.vlgmr.msra.gmra.mrb[4].mxu1 %vm32_vm0, %v1637_v15 }
  0x30   :  { %1967 = vmatpush3.bf16.msra.mxu1 %v2202_v9  ;;  %1832 = vmatprep.mubr.msk.f32.mxu1 %vm2148_vm1, %v2147_v1 }
  0x31   :  { %1968 = vmatprep.subr.bf16.mxu1 %v2146_v0 }
  0x34   :  { %1970 = vmatpush3.bf16.msra.mxu1 %v2209_v13 }
  0x35   :  { %1977 = vmatprep.subr.bf16.mxu1 %v2146_v0 }
  0x9a   :  { %v233_v37 = vpop.permute.xlu1 %232 }
  0x9b   :  { %vm234_vm4 = vcmp.eq.s32.totalorder %v233_v37, 1 }
  0xf1   :  { %v120_v19 = vpop.f32.mrb[0].mxu0 }
  0xf2   :  { %v193_v21 = vpop.f32.mrb[0].mxu1  ;;  %v1757_v22 = vpop.f32.mrb[1].mxu0 }
  0xf3   :  { %v194_v23 = vadd.f32 %v193_v21, %v120_v19  ;;  %v1768_v24 = vpop.f32.mrb[1].mxu1 }
  0xf5   :  { %v203_v25 = vadd.f32 %v2242_v20, %v194_v23 }
  0xf7   :  { %v1631_v26 = vmul.f32 -1.442695, %v203_v25 }
  0xf9   :  { %2031 = vpow2.f32 %v1631_v26 }
  0xfa   :  { %2033 = vtanh.f32 %v203_v25  ;;  %v394_v50 = vpop.f32.mrb[2].mxu1 }
  0xfb   :  { %v1790_v51 = vpop.f32.mrb[3].mxu1 }
 0x102   :  { %v589_v24 = vpop.f32.mrb[4].mxu1 }
 0x103   :  { %v2032_v27 = vpop.eup %2031  ;;  %v1812_v25 = vpop.f32.mrb[5].mxu1 }
 0x104   :  { %v207_v28 = vadd.f32 1.0, %v2032_v27  ;;  %v2034_v31 = vpop.eup %2033 }
 0x106   :  { %2035 = vrcp.f32 %v207_v28 }
 0x110   :  { %v2036_v32 = vpop.eup %2035 }
 0x111   :  { %v211_v33 = vsel %vm46_vm3, %v2036_v32, %v2034_v31 }
 0x112   :  { %214 = vrot.lane.b32.xlu0 %v211_v33, %s2150_s3  ;;  %v212_v38 = vmul.f32 %v211_v33, %v50_v36 }
 0x184   :  { %v215_v34 = vpop.permute.xlu0 %214 }
 0x185   :  { %v217_v35 = vmul.f32 %v215_v34, %v211_v33  ;;  %v1638_v34 = vld [vmem:[%s2484_s1 + $0x10] sm:$0xff] }
 0x186   :  { %vm619_vm7 = vcmp.gt.f32.partialorder %v1638_v34, 0.0 }
 0x187   :  { %219 = vrot.lane.b32.xlu0 %v217_v35, %s2151_s8 }
 0x18b   :  { %237 = vrot.lane.b32.xlu0 %v49_v14, %s2150_s3 }
 0x1f9   :  { %v220_v39 = vpop.permute.xlu0 %219 }
 0x1fa   :  { %v222_v40 = vadd.f32 %v220_v39, %v212_v38  ;;  %v620_v38 = vsel %vm619_vm7, 1, %v2149_v17 }
 0x1fc   :  { %2037 = vtanh.f32 %v222_v40  ;;  %v235_v41 = vsel %vm234_vm4, %v222_v40, %v50_v36 }
 0x1fd   :  { %236 = vst.msk [vmem:[#allocation3] sm:$0xff] %vm32_vm0, %v235_v41  ;;  %v238_v45 = vpop.permute.xlu0 %237 }
 0x204   :  { %v251_v6 = vld [vmem:[#allocation3] sm:$0xff] }
 0x206   :  { %v2038_v42 = vpop.eup %2037 }
 0x207   :  { %225 = vrot.lane.b32.xlu1 %v2038_v42, %s2150_s3 }
 0x279   :  { %v226_v44 = vpop.permute.xlu1 %225 }
 0x27a   :  { %v228_v46 = vmul.f32 %v226_v44, %v211_v33 }
 0x27c   :  { %v240_v47 = vsel %vm234_vm4, %v228_v46, %v238_v45 }
 0x27d   :  { %242 = vrot.lane.b32.xlu1 %v240_v47, %s2150_s3 }
 0x2ef   :  { %v243_v48 = vpop.permute.xlu1 %242 }
 0x2f0   :  { %245 = vst.msk [vmem:[#allocation2] sm:$0xff] %vm32_vm0, %v243_v48  ;;  %v1642_v48 = vld [vmem:[%s2483_s0 + $0x18] sm:$0xff] }
 0x2f1   :  { %1833 = vmatmul.mubr.msk.f32.vlgmr.msra.gmra.mrb[6].mxu1 %vm32_vm0, %v1642_v48 }
 0x2f2   :  { %1979 = vmatpush3.bf16.msra.mxu1 %v2202_v9  ;;  %1854 = vmatprep.mubr.msk.f32.mxu1 %vm2148_vm1, %v2147_v1 }
 0x2f3   :  { %1980 = vmatprep.subr.bf16.mxu1 %v2146_v0 }
 0x2f6   :  { %1982 = vmatpush3.bf16.msra.mxu1 %v2209_v13 }
 0x2f7   :  { %v250_v49 = vld [vmem:[#allocation2] sm:$0xff]  ;;  %1989 = vmatprep.subr.bf16.mxu1 %v2146_v0 }
 0x2f8   :  { %1778 = vmatmul.mubr.msk.f32.vlgmr.msra.gmra.mrb[2].mxu0 %vm32_vm0, %v250_v49 }
 0x2f9   :  { %1949 = vmatpush3.bf16.msra.mxu0 %v2200_v5  ;;  %1799 = vmatprep.mubr.msk.f32.mxu0 %vm2148_vm1, %v2147_v1 }
 0x2fa   :  { %1950 = vmatprep.subr.bf16.mxu0 %v2146_v0 }
 0x2fd   :  { %1952 = vmatpush3.bf16.msra.mxu0 %v2205_v12 }
 0x2fe   :  { %1959 = vmatprep.subr.bf16.mxu0 %v2146_v0 }
 0x3cb   :  { %v321_v52 = vpop.f32.mrb[2].mxu0 }
 0x3cc   :  { %v395_v53 = vadd.f32 %v394_v50, %v321_v52  ;;  %v1779_v54 = vpop.f32.mrb[3].mxu0 }
 0x3ce   :  { %v398_v55 = vadd.f32 %v2242_v20, %v395_v53 }
 0x3d0   :  { %v1636_v56 = vmul.f32 -1.442695, %v398_v55 }
 0x3d2   :  { %2039 = vpow2.f32 %v1636_v56 }
 0x3d3   :  { %2041 = vtanh.f32 %v398_v55  ;;  %v784_v55 = vpop.f32.mrb[6].mxu1 }
 0x3d4   :  { %v1834_v56 = vpop.f32.mrb[7].mxu1 }
 0x3dc   :  { %v2040_v57 = vpop.eup %2039 }
 0x3dd   :  { %v402_v58 = vadd.f32 1.0, %v2040_v57  ;;  %v2042_v60 = vpop.eup %2041 }
 0x3df   :  { %2043 = vrcp.f32 %v402_v58 }
 0x3e9   :  { %v2044_v61 = vpop.eup %2043 }
 0x3ea   :  { %v406_v62 = vsel %vm46_vm3, %v2044_v61, %v2042_v60 }
 0x3eb   :  { %409 = vrot.lane.b32.xlu0 %v406_v62, %s2150_s3  ;;  %v407_v7 = vmul.f32 %v406_v62, %v251_v6 }
 0x3ef   :  { %427 = vperm.xlu0 %2030, %v425_v63  }
 0x45d   :  { %v410_v2 = vpop.permute.xlu0 %409 }
 0x45e   :  { %v412_v3 = vmul.f32 %v410_v2, %v406_v62  ;;  %v1643_v2 = vld [vmem:[%s2484_s1 + $0x18] sm:$0xff] }
 0x45f   :  { %vm814_vm9 = vcmp.gt.f32.partialorder %v1643_v2, 0.0 }
 0x460   :  { %414 = vrot.lane.b32.xlu1 %v412_v3, %s2151_s8 }
 0x46e   :  { %v428_v4 = vpop.permute.xlu0 %427 }
 0x46f   :  { %vm429_vm6 = vcmp.eq.s32.totalorder %v428_v4, 1 }
 0x4d2   :  { %v415_v8 = vpop.permute.xlu1 %414 }
 0x4d3   :  { %v417_v10 = vadd.f32 %v415_v8, %v407_v7  ;;  %v815_v7 = vsel %vm814_vm9, 1, %v2149_v17 }
 0x4d5   :  { %2045 = vtanh.f32 %v417_v10  ;;  %v430_v11 = vsel %vm429_vm6, %v417_v10, %v251_v6 }
 0x4d6   :  { %431 = vst.msk [vmem:[#allocation3] sm:$0xff] %vm32_vm0, %v430_v11 }
 0x4dd   :  { %v446_v41 = vld [vmem:[#allocation3] sm:$0xff] }
 0x4df   :  { %v2046_v14 = vpop.eup %2045 }
 0x4e0   :  { %420 = vrot.lane.b32.xlu1 %v2046_v14, %s2150_s3 }
 0x4e4   :  { %432 = vrot.lane.b32.xlu1 %v250_v49, %s2150_s3 }
 0x552   :  { %v421_v16 = vpop.permute.xlu1 %420 }
 0x553   :  { %v423_v18 = vmul.f32 %v421_v16, %v406_v62 }
 0x556   :  { %v433_v19 = vpop.permute.xlu1 %432 }
 0x557   :  { %v435_v21 = vsel %vm429_vm6, %v423_v18, %v433_v19 }
 0x558   :  { %437 = vrot.lane.b32.xlu0 %v435_v21, %s2150_s3 }
 0x5ca   :  { %v438_v22 = vpop.permute.xlu0 %437 }
 0x5cb   :  { %440 = vst.msk [vmem:[#allocation2] sm:$0xff] %vm32_vm0, %v438_v22  ;;  %v1647_v22 = vld [vmem:[%s2483_s0 + $0x20] sm:$0xff] }
 0x5cc   :  { %1855 = vmatmul.mubr.msk.f32.vlgmr.msra.gmra.mrb[8].mxu1 %vm32_vm0, %v1647_v22 }
 0x5cd   :  { %1991 = vmatpush3.bf16.msra.mxu1 %v2202_v9  ;;  %1876 = vmatprep.mubr.msk.f32.mxu1 %vm2148_vm1, %v2147_v1 }
 0x5ce   :  { %1992 = vmatprep.subr.bf16.mxu1 %v2146_v0 }
 0x5d1   :  { %1994 = vmatpush3.bf16.msra.mxu1 %v2209_v13 }
 0x5d2   :  { %v445_v23 = vld [vmem:[#allocation2] sm:$0xff]  ;;  %2001 = vmatprep.subr.bf16.mxu1 %v2146_v0 }
 0x5d3   :  { %1800 = vmatmul.mubr.msk.f32.vlgmr.msra.gmra.mrb[4].mxu0 %vm32_vm0, %v445_v23 }
 0x5d4   :  { %1961 = vmatpush3.bf16.msra.mxu0 %v2200_v5  ;;  %1821 = vmatprep.mubr.msk.f32.mxu0 %vm2148_vm1, %v2147_v1 }
 0x5d5   :  { %1962 = vmatprep.subr.bf16.mxu0 %v2146_v0 }
 0x5d8   :  { %1964 = vmatpush3.bf16.msra.mxu0 %v2205_v12 }
 0x5d9   :  { %1971 = vmatprep.subr.bf16.mxu0 %v2146_v0 }
 0x6a6   :  { %v516_v26 = vpop.f32.mrb[4].mxu0 }
 0x6a7   :  { %v590_v27 = vadd.f32 %v589_v24, %v516_v26  ;;  %v1801_v28 = vpop.f32.mrb[5].mxu0 }
 0x6a9   :  { %v593_v29 = vadd.f32 %v2242_v20, %v590_v27 }
 0x6ab   :  { %v1641_v31 = vmul.f32 -1.442695, %v593_v29 }
 0x6ad   :  { %2047 = vpow2.f32 %v1641_v31 }
 0x6ae   :  { %2049 = vtanh.f32 %v593_v29  ;;  %v979_v29 = vpop.f32.mrb[8].mxu1 }
 0x6af   :  { %v1856_v31 = vpop.f32.mrb[9].mxu1 }
 0x6b7   :  { %v2048_v32 = vpop.eup %2047 }
 0x6b8   :  { %v597_v33 = vadd.f32 1.0, %v2048_v32  ;;  %v2050_v35 = vpop.eup %2049 }
 0x6ba   :  { %2051 = vrcp.f32 %v597_v33 }
 0x6c4   :  { %v2052_v36 = vpop.eup %2051 }
 0x6c5   :  { %v601_v37 = vsel %vm46_vm3, %v2052_v36, %v2050_v35 }
 0x6c6   :  { %604 = vrot.lane.b32.xlu1 %v601_v37, %s2150_s3  ;;  %v602_v43 = vmul.f32 %v601_v37, %v446_v41 }
 0x6ca   :  { %622 = vperm.xlu1 %2029, %v620_v38  }
 0x6ce   :  { %627 = vrot.lane.b32.xlu1 %v445_v23, %s2150_s3 }
 0x738   :  { %v605_v39 = vpop.permute.xlu1 %604 }
 0x739   :  { %v607_v40 = vmul.f32 %v605_v39, %v601_v37  ;;  %v1648_v39 = vld [vmem:[%s2484_s1 + $0x20] sm:$0xff] }
 0x73a   :  { %vm1009_vm11 = vcmp.gt.f32.partialorder %v1648_v39, 0.0 }
 0x73b   :  { %609 = vrot.lane.b32.xlu0 %v607_v40, %s2151_s8 }
 0x749   :  { %v623_v42 = vpop.permute.xlu1 %622 }
 0x74a   :  { %vm624_vm8 = vcmp.eq.s32.totalorder %v623_v42, 1 }
 0x74d   :  { %v628_v51 = vpop.permute.xlu1 %627 }
 0x7ad   :  { %v610_v44 = vpop.permute.xlu0 %609 }
 0x7ae   :  { %v612_v45 = vadd.f32 %v610_v44, %v602_v43  ;;  %v1010_v43 = vsel %vm1009_vm11, 1, %v2149_v17 }
 0x7b0   :  { %2053 = vtanh.f32 %v612_v45  ;;  %v625_v46 = vsel %vm624_vm8, %v612_v45, %v446_v41 }
 0x7b1   :  { %626 = vst.msk [vmem:[#allocation3] sm:$0xff] %vm32_vm0, %v625_v46 }
 0x7b8   :  { %v641_v11 = vld [vmem:[#allocation3] sm:$0xff] }
 0x7ba   :  { %v2054_v47 = vpop.eup %2053 }
 0x7bb   :  { %615 = vrot.lane.b32.xlu0 %v2054_v47, %s2150_s3 }
 0x82d   :  { %v616_v49 = vpop.permute.xlu0 %615 }
 0x82e   :  { %v618_v50 = vmul.f32 %v616_v49, %v601_v37 }
 0x830   :  { %v630_v52 = vsel %vm624_vm8, %v618_v50, %v628_v51 }
 0x831   :  { %632 = vrot.lane.b32.xlu0 %v630_v52, %s2150_s3 }
 0x8a3   :  { %v633_v53 = vpop.permute.xlu0 %632 }
 0x8a4   :  { %635 = vst.msk [vmem:[#allocation2] sm:$0xff] %vm32_vm0, %v633_v53  ;;  %v1652_v53 = vld [vmem:[%s2483_s0 + $0x28] sm:$0xff] }
 0x8a5   :  { %1877 = vmatmul.mubr.msk.f32.vlgmr.msra.gmra.mrb[10].mxu1 %vm32_vm0, %v1652_v53 }
 0x8a6   :  { %2003 = vmatpush3.bf16.msra.mxu1 %v2202_v9  ;;  %1898 = vmatprep.mubr.msk.f32.mxu1 %vm2148_vm1, %v2147_v1 }
 0x8a7   :  { %2004 = vmatprep.subr.bf16.mxu1 %v2146_v0 }
 0x8aa   :  { %2006 = vmatpush3.bf16.msra.mxu1 %v2209_v13 }
 0x8ab   :  { %v640_v54 = vld [vmem:[#allocation2] sm:$0xff]  ;;  %2013 = vmatprep.subr.bf16.mxu1 %v2146_v0 }
 0x8ac   :  { %1822 = vmatmul.mubr.msk.f32.vlgmr.msra.gmra.mrb[6].mxu0 %vm32_vm0, %v640_v54 }
 0x8ad   :  { %1973 = vmatpush3.bf16.msra.mxu0 %v2200_v5  ;;  %1843 = vmatprep.mubr.msk.f32.mxu0 %vm2148_vm1, %v2147_v1 }
 0x8ae   :  { %1974 = vmatprep.subr.bf16.mxu0 %v2146_v0 }
 0x8b1   :  { %1976 = vmatpush3.bf16.msra.mxu0 %v2205_v12 }
 0x8b2   :  { %1983 = vmatprep.subr.bf16.mxu0 %v2146_v0 }
 0x97f   :  { %v711_v57 = vpop.f32.mrb[6].mxu0 }
 0x980   :  { %v785_v58 = vadd.f32 %v784_v55, %v711_v57  ;;  %v1823_v59 = vpop.f32.mrb[7].mxu0 }
 0x982   :  { %v788_v60 = vadd.f32 %v2242_v20, %v785_v58 }
 0x984   :  { %v1646_v61 = vmul.f32 -1.442695, %v788_v60 }
 0x986   :  { %2055 = vpow2.f32 %v1646_v61 }
 0x987   :  { %2057 = vtanh.f32 %v788_v60  ;;  %v1174_v60 = vpop.f32.mrb[10].mxu1 }
 0x988   :  { %v1878_v61 = vpop.f32.mrb[11].mxu1 }
 0x990   :  { %v2056_v62 = vpop.eup %2055 }
 0x991   :  { %v792_v63 = vadd.f32 1.0, %v2056_v62  ;;  %v2058_v3 = vpop.eup %2057 }
 0x993   :  { %2059 = vrcp.f32 %v792_v63 }
 0x99d   :  { %v2060_v4 = vpop.eup %2059 }
 0x99e   :  { %v796_v6 = vsel %vm46_vm3, %v2060_v4, %v2058_v3 }
 0x99f   :  { %799 = vrot.lane.b32.xlu1 %v796_v6, %s2150_s3  ;;  %v797_v15 = vmul.f32 %v796_v6, %v641_v11 }
 0x9a3   :  { %817 = vperm.xlu1 %2029, %v815_v7  }
 0x9a7   :  { %822 = vrot.lane.b32.xlu1 %v640_v54, %s2150_s3 }
 0xa11   :  { %v800_v8 = vpop.permute.xlu1 %799 }
 0xa12   :  { %v802_v10 = vmul.f32 %v800_v8, %v796_v6  ;;  %v1653_v8 = vld [vmem:[%s2484_s1 + $0x28] sm:$0xff] }
 0xa13   :  { %vm1204_vm13 = vcmp.gt.f32.partialorder %v1653_v8, 0.0 }
 0xa14   :  { %804 = vrot.lane.b32.xlu0 %v802_v10, %s2151_s8 }
 0xa22   :  { %v818_v14 = vpop.permute.xlu1 %817 }
 0xa23   :  { %vm819_vm10 = vcmp.eq.s32.totalorder %v818_v14, 1 }
 0xa26   :  { %v823_v25 = vpop.permute.xlu1 %822 }
 0xa86   :  { %v805_v16 = vpop.permute.xlu0 %804 }
 0xa87   :  { %v807_v18 = vadd.f32 %v805_v16, %v797_v15  ;;  %v1205_v15 = vsel %vm1204_vm13, 1, %v2149_v17 }
 0xa89   :  { %2061 = vtanh.f32 %v807_v18  ;;  %v820_v19 = vsel %vm819_vm10, %v807_v18, %v641_v11 }
 0xa8a   :  { %821 = vst.msk [vmem:[#allocation3] sm:$0xff] %vm32_vm0, %v820_v19 }
 0xa91   :  { %v836_v46 = vld [vmem:[#allocation3] sm:$0xff] }
 0xa93   :  { %v2062_v21 = vpop.eup %2061 }
 0xa94   :  { %810 = vrot.lane.b32.xlu0 %v2062_v21, %s2150_s3 }
 0xb06   :  { %v811_v23 = vpop.permute.xlu0 %810 }
 0xb07   :  { %v813_v24 = vmul.f32 %v811_v23, %v796_v6 }
 0xb09   :  { %v825_v26 = vsel %vm819_vm10, %v813_v24, %v823_v25 }
 0xb0a   :  { %827 = vrot.lane.b32.xlu0 %v825_v26, %s2150_s3 }
 0xb7c   :  { %v828_v27 = vpop.permute.xlu0 %827 }
 0xb7d   :  { %830 = vst.msk [vmem:[#allocation2] sm:$0xff] %vm32_vm0, %v828_v27  ;;  %v1657_v27 = vld [vmem:[%s2483_s0 + $0x30] sm:$0xff] }
 0xb7e   :  { %1899 = vmatmul.mubr.msk.f32.vlgmr.msra.gmra.mrb[12].mxu1 %vm32_vm0, %v1657_v27 }
 0xb7f   :  { %2015 = vmatpush3.bf16.msra.mxu1 %v2202_v9  ;;  %1920 = vmatprep.mubr.msk.f32.mxu1 %vm2148_vm1, %v2147_v1 }
 0xb80   :  { %2016 = vmatprep.subr.bf16.mxu1 %v2146_v0 }
 0xb83   :  { %2018 = vmatpush3.bf16.msra.mxu1 %v2209_v13 }
 0xb84   :  { %v835_v28 = vld [vmem:[#allocation2] sm:$0xff] }
 0xb85   :  { %1844 = vmatmul.mubr.msk.f32.vlgmr.msra.gmra.mrb[8].mxu0 %vm32_vm0, %v835_v28 }
 0xb86   :  { %1985 = vmatpush3.bf16.msra.mxu0 %v2200_v5  ;;  %1865 = vmatprep.mubr.msk.f32.mxu0 %vm2148_vm1, %v2147_v1 }
 0xb87   :  { %1986 = vmatprep.subr.bf16.mxu0 %v2146_v0 }
 0xb8a   :  { %1988 = vmatpush3.bf16.msra.mxu0 %v2205_v12 }
 0xb8b   :  { %1995 = vmatprep.subr.bf16.mxu0 %v2146_v0 }
 0xc51   :  { %v1369_v9 = vpop.f32.mrb[12].mxu1 }
 0xc52   :  { %v1900_v13 = vpop.f32.mrb[13].mxu1 }
 0xc58   :  { %v906_v32 = vpop.f32.mrb[8].mxu0 }
 0xc59   :  { %v980_v33 = vadd.f32 %v979_v29, %v906_v32  ;;  %v1845_v34 = vpop.f32.mrb[9].mxu0 }
 0xc5b   :  { %v983_v35 = vadd.f32 %v2242_v20, %v980_v33 }
 0xc5d   :  { %v1651_v36 = vmul.f32 -1.442695, %v983_v35 }
 0xc5f   :  { %2063 = vpow2.f32 %v1651_v36 }
 0xc60   :  { %2065 = vtanh.f32 %v983_v35 }
 0xc69   :  { %v2064_v37 = vpop.eup %2063 }
 0xc6a   :  { %v987_v38 = vadd.f32 1.0, %v2064_v37  ;;  %v2066_v40 = vpop.eup %2065 }
 0xc6c   :  { %2067 = vrcp.f32 %v987_v38 }
 0xc76   :  { %v2068_v41 = vpop.eup %2067 }
 0xc77   :  { %v991_v42 = vsel %vm46_vm3, %v2068_v41, %v2066_v40 }
 0xc78   :  { %994 = vrot.lane.b32.xlu1 %v991_v42, %s2150_s3  ;;  %v992_v48 = vmul.f32 %v991_v42, %v836_v46 }
 0xc7c   :  { %1012 = vperm.xlu1 %2029, %v1010_v43  }
 0xc80   :  { %1017 = vrot.lane.b32.xlu1 %v835_v28, %s2150_s3 }
 0xcea   :  { %v995_v44 = vpop.permute.xlu1 %994 }
 0xceb   :  { %v997_v45 = vmul.f32 %v995_v44, %v991_v42 }
 0xced   :  { %999 = vrot.lane.b32.xlu0 %v997_v45, %s2151_s8 }
 0xcfb   :  { %v1013_v47 = vpop.permute.xlu1 %1012 }
 0xcfc   :  { %vm1014_vm12 = vcmp.eq.s32.totalorder %v1013_v47, 1 }
 0xcff   :  { %v1018_v56 = vpop.permute.xlu1 %1017 }
 0xd5f   :  { %v1000_v49 = vpop.permute.xlu0 %999 }
 0xd60   :  { %v1002_v50 = vadd.f32 %v1000_v49, %v992_v48 }
 0xd62   :  { %2069 = vtanh.f32 %v1002_v50  ;;  %v1015_v51 = vsel %vm1014_vm12, %v1002_v50, %v836_v46 }
 0xd63   :  { %1016 = vst.msk [vmem:[#allocation3] sm:$0xff] %vm32_vm0, %v1015_v51 }
 0xd6a   :  { %v1031_v19 = vld [vmem:[#allocation3] sm:$0xff] }
 0xd6c   :  { %v2070_v52 = vpop.eup %2069 }
 0xd6d   :  { %1005 = vrot.lane.b32.xlu0 %v2070_v52, %s2150_s3  ;;  %v1662_v52 = vld [vmem:[%s2483_s0 + $0x38] sm:$0xff] }
 0xd6e   :  { %1921 = vmatmul.mubr.msk.f32.vlgmr.msra.gmra.mrb[14].mxu1 %vm32_vm0, %v1662_v52 }
 0xddf   :  { %v1006_v54 = vpop.permute.xlu0 %1005 }
 0xde0   :  { %v1008_v55 = vmul.f32 %v1006_v54, %v991_v42 }
 0xde2   :  { %v1020_v57 = vsel %vm1014_vm12, %v1008_v55, %v1018_v56 }
 0xde3   :  { %1022 = vrot.lane.b32.xlu0 %v1020_v57, %s2150_s3 }
 0xe55   :  { %v1023_v58 = vpop.permute.xlu0 %1022 }
 0xe56   :  { %1025 = vst.msk [vmem:[#allocation2] sm:$0xff] %vm32_vm0, %v1023_v58 }
 0xe5d   :  { %v1030_v59 = vld [vmem:[#allocation2] sm:$0xff] }
 0xe5e   :  { %1866 = vmatmul.mubr.msk.f32.vlgmr.msra.gmra.mrb[10].mxu0 %vm32_vm0, %v1030_v59 }
 0xe5f   :  { %1997 = vmatpush3.bf16.msra.mxu0 %v2200_v5  ;;  %1887 = vmatprep.mubr.msk.f32.mxu0 %vm2148_vm1, %v2147_v1 }
 0xe60   :  { %1998 = vmatprep.subr.bf16.mxu0 %v2146_v0 }
 0xe63   :  { %2000 = vmatpush3.bf16.msra.mxu0 %v2205_v12 }
 0xe64   :  { %2007 = vmatprep.subr.bf16.mxu0 %v2146_v0 }
 0xf31   :  { %v1101_v62 = vpop.f32.mrb[10].mxu0 }
 0xf32   :  { %v1175_v63 = vadd.f32 %v1174_v60, %v1101_v62  ;;  %v1867_v2 = vpop.f32.mrb[11].mxu0 }
 0xf34   :  { %v1178_v3 = vadd.f32 %v2242_v20, %v1175_v63 }
 0xf36   :  { %v1656_v4 = vmul.f32 -1.442695, %v1178_v3 }
 0xf38   :  { %2071 = vpow2.f32 %v1656_v4 }
 0xf39   :  { %2073 = vtanh.f32 %v1178_v3 }
 0xf42   :  { %v2072_v6 = vpop.eup %2071 }
 0xf43   :  { %v1182_v7 = vadd.f32 1.0, %v2072_v6  ;;  %v2074_v10 = vpop.eup %2073 }
 0xf45   :  { %2075 = vrcp.f32 %v1182_v7  ;;  %v1663_v7 = vld [vmem:[%s2484_s1 + $0x38] sm:$0xff] }
 0xf46   :  { %vm1594_vm2 = vcmp.gt.f32.partialorder %v1663_v7, 0.0 }
 0xf4f   :  { %v2076_v11 = vpop.eup %2075 }
 0xf50   :  { %v1186_v14 = vsel %vm46_vm3, %v2076_v11, %v2074_v10 }
 0xf51   :  { %1189 = vrot.lane.b32.xlu1 %v1186_v14, %s2150_s3  ;;  %v1187_v22 = vmul.f32 %v1186_v14, %v1031_v19 }
 0xf55   :  { %1207 = vperm.xlu1 %2029, %v1205_v15  }
 0xf59   :  { %1212 = vrot.lane.b32.xlu1 %v1030_v59, %s2150_s3  ;;  %v1564_v59 = vpop.f32.mrb[14].mxu1 }
 0xf5a   :  { %v1922_v60 = vpop.f32.mrb[15].mxu1 }
 0xfc3   :  { %v1190_v16 = vpop.permute.xlu1 %1189 }
 0xfc4   :  { %v1192_v18 = vmul.f32 %v1190_v16, %v1186_v14 }
 0xfc6   :  { %1194 = vrot.lane.b32.xlu0 %v1192_v18, %s2151_s8 }
 0xfd4   :  { %v1208_v21 = vpop.permute.xlu1 %1207 }
 0xfd5   :  { %vm1209_vm14 = vcmp.eq.s32.totalorder %v1208_v21, 1 }
 0xfd8   :  { %v1213_v31 = vpop.permute.xlu1 %1212 }
0x1038   :  { %v1195_v23 = vpop.permute.xlu0 %1194 }
0x1039   :  { %v1197_v24 = vadd.f32 %v1195_v23, %v1187_v22 }
0x103b   :  { %2077 = vtanh.f32 %v1197_v24  ;;  %v1210_v25 = vsel %vm1209_vm14, %v1197_v24, %v1031_v19 }
0x103c   :  { %1211 = vst.msk [vmem:[#allocation3] sm:$0xff] %vm32_vm0, %v1210_v25 }
0x1043   :  { %v1226_v45 = vld [vmem:[#allocation3] sm:$0xff] }
0x1045   :  { %v2078_v26 = vpop.eup %2077 }
0x1046   :  { %1200 = vrot.lane.b32.xlu0 %v2078_v26, %s2150_s3 }
0x10b8   :  { %v1201_v28 = vpop.permute.xlu0 %1200 }
0x10b9   :  { %v1203_v29 = vmul.f32 %v1201_v28, %v1186_v14 }
0x10bb   :  { %v1215_v32 = vsel %vm1209_vm14, %v1203_v29, %v1213_v31 }
0x10bc   :  { %1217 = vrot.lane.b32.xlu0 %v1215_v32, %s2150_s3 }
0x112e   :  { %v1218_v33 = vpop.permute.xlu0 %1217 }
0x112f   :  { %1220 = vst.msk [vmem:[#allocation2] sm:$0xff] %vm32_vm0, %v1218_v33 }
0x1136   :  { %v1225_v34 = vld [vmem:[#allocation2] sm:$0xff] }
0x1137   :  { %1888 = vmatmul.mubr.msk.f32.vlgmr.msra.gmra.mrb[12].mxu0 %vm32_vm0, %v1225_v34 }
0x1138   :  { %2009 = vmatpush3.bf16.msra.mxu0 %v2200_v5  ;;  %1909 = vmatprep.mubr.msk.f32.mxu0 %vm2148_vm1, %v2147_v1  ;;  %v1658_v1 = vld [vmem:[%s2484_s1 + $0x30] sm:$0xff]  ;;  %s2152_s1 = smov [#allocation7]  }
0x1139   :  { %2010 = vmatprep.subr.bf16.mxu0 %v2146_v0  ;;  %vm1399_vm15 = vcmp.gt.f32.partialorder %v1658_v1, 0.0 }
0x113a   :  { %v1400_v42 = vsel %vm1399_vm15, 1, %v2149_v17 }
0x113c   :  { %2012 = vmatpush3.bf16.msra.mxu0 %v2205_v12 }
0x120a   :  { %v1296_v35 = vpop.f32.mrb[12].mxu0 }
0x120b   :  { %v1370_v36 = vadd.f32 %v1369_v9, %v1296_v35  ;;  %v1889_v37 = vpop.f32.mrb[13].mxu0 }
0x120d   :  { %v1373_v38 = vadd.f32 %v2242_v20, %v1370_v36 }
0x120f   :  { %v1661_v39 = vmul.f32 -1.442695, %v1373_v38 }
0x1211   :  { %2079 = vpow2.f32 %v1661_v39 }
0x1212   :  { %2081 = vtanh.f32 %v1373_v38 }
0x121b   :  { %v2080_v40 = vpop.eup %2079 }
0x121c   :  { %v1377_v41 = vadd.f32 1.0, %v2080_v40  ;;  %v2082_v0 = vpop.eup %2081 }
0x121e   :  { %2083 = vrcp.f32 %v1377_v41 }
0x1228   :  { %v2084_v5 = vpop.eup %2083 }
0x1229   :  { %v1381_v12 = vsel %vm46_vm3, %v2084_v5, %v2082_v0 }
0x122a   :  { %1384 = vrot.lane.b32.xlu1 %v1381_v12, %s2150_s3  ;;  %v1382_v47 = vmul.f32 %v1381_v12, %v1226_v45 }
0x122e   :  { %1402 = vperm.xlu1 %2029, %v1400_v42  }
0x1232   :  { %1407 = vrot.lane.b32.xlu1 %v1225_v34, %s2150_s3 }
0x129c   :  { %v1385_v43 = vpop.permute.xlu1 %1384 }
0x129d   :  { %v1387_v44 = vmul.f32 %v1385_v43, %v1381_v12 }
0x129f   :  { %1389 = vrot.lane.b32.xlu0 %v1387_v44, %s2151_s8 }
0x12ad   :  { %v1403_v46 = vpop.permute.xlu1 %1402 }
0x12ae   :  { %vm1404_vm1 = vcmp.eq.s32.totalorder %v1403_v46, 1 }
0x12b1   :  { %v1408_v55 = vpop.permute.xlu1 %1407 }
0x1311   :  { %v1390_v48 = vpop.permute.xlu0 %1389 }
0x1312   :  { %v1392_v49 = vadd.f32 %v1390_v48, %v1382_v47 }
0x1314   :  { %2085 = vtanh.f32 %v1392_v49  ;;  %v1405_v50 = vsel %vm1404_vm1, %v1392_v49, %v1226_v45 }
0x1315   :  { %1406 = vst.msk [vmem:[#allocation3] sm:$0xff] %vm32_vm0, %v1405_v50 }
0x131c   :  { %v1421_v16 = vld [vmem:[#allocation3] sm:$0xff] }
0x131e   :  { %v2086_v51 = vpop.eup %2085 }
0x131f   :  { %1395 = vrot.lane.b32.xlu0 %v2086_v51, %s2150_s3 }
0x1391   :  { %v1396_v53 = vpop.permute.xlu0 %1395 }
0x1392   :  { %v1398_v54 = vmul.f32 %v1396_v53, %v1381_v12 }
0x1394   :  { %v1410_v56 = vsel %vm1404_vm1, %v1398_v54, %v1408_v55 }
0x1395   :  { %1412 = vrot.lane.b32.xlu0 %v1410_v56, %s2150_s3 }
0x1407   :  { %v1413_v57 = vpop.permute.xlu0 %1412 }
0x1408   :  { %1415 = vst.msk [vmem:[#allocation2] sm:$0xff] %vm32_vm0, %v1413_v57 }
0x140f   :  { %v1420_v58 = vld [vmem:[#allocation2] sm:$0xff] }
0x1410   :  { %1910 = vmatmul.mubr.msk.f32.vlgmr.msra.gmra.mrb[14].mxu0 %vm32_vm0, %v1420_v58 }
0x14e3   :  { %v1491_v61 = vpop.f32.mrb[14].mxu0 }
0x14e4   :  { %v1565_v62 = vadd.f32 %v1564_v59, %v1491_v61  ;;  %v1911_v63 = vpop.f32.mrb[15].mxu0 }
0x14e6   :  { %v1568_v2 = vadd.f32 %v2242_v20, %v1565_v62  ;;  %v1595_v20 = vsel %vm1594_vm2, 1, %v2149_v17 }
0x14e8   :  { %v1666_v3 = vmul.f32 -1.442695, %v1568_v2 }
0x14ea   :  { %2087 = vpow2.f32 %v1666_v3 }
0x14eb   :  { %2089 = vtanh.f32 %v1568_v2 }
0x14f4   :  { %v2088_v4 = vpop.eup %2087 }
0x14f5   :  { %v1572_v6 = vadd.f32 1.0, %v2088_v4  ;;  %v2090_v8 = vpop.eup %2089 }
0x14f7   :  { %2091 = vrcp.f32 %v1572_v6 }
0x1501   :  { %v2092_v10 = vpop.eup %2091 }
0x1502   :  { %v1576_v11 = vsel %vm46_vm3, %v2092_v10, %v2090_v8 }
0x1503   :  { %1579 = vrot.lane.b32.xlu1 %v1576_v11, %s2150_s3  ;;  %v1577_v19 = vmul.f32 %v1576_v11, %v1421_v16 }
0x1507   :  { %1597 = vperm.xlu1 %2029, %v1595_v20  }
0x150b   :  { %1602 = vrot.lane.b32.xlu1 %v1420_v58, %s2150_s3 }
0x1575   :  { %v1580_v14 = vpop.permute.xlu1 %1579 }
0x1576   :  { %v1582_v15 = vmul.f32 %v1580_v14, %v1576_v11 }
0x1578   :  { %1584 = vrot.lane.b32.xlu0 %v1582_v15, %s2151_s8  ;;  %s1619_s8 = sshll.u32 %s2152_s1, 4  ;;  %s1620_s8 = int_to_ptr.vmem [resolvable:$true] %s1619_s8 }
0x1579   :  { %s2117_s10 = scalar_lea.vmem %s1620_s8, 128  ;;  %p2122_p9 = scmp.lt.s32.totalorder %s1620_s8, %s1620_s8 }
0x157a   :  { %p2118_p8 = scmp.ne.s32.totalorder %s1620_s8, %s2117_s10  ;;  %p2123_p10 = scmp.lt.s32.totalorder %s2117_s10, %s2117_s10 }
0x157c   :  { %p2124_p11 = por %p2123_p10, %p2122_p9 }
0x157e   :  { %p2125_p12 = pnand %p2124_p11, %p2118_p8 }
0x1586   :  { %v1598_v18 = vpop.permute.xlu1 %1597 }
0x1587   :  { %vm1599_vm4 = vcmp.eq.s32.totalorder %v1598_v18, 1 }
0x158a   :  { %v1603_v25 = vpop.permute.xlu1 %1602 }
0x15ea   :  { %v1585_v21 = vpop.permute.xlu0 %1584 }
0x15eb   :  { %v1587_v22 = vadd.f32 %v1585_v21, %v1577_v19 }
0x15ed   :  { %2093 = vtanh.f32 %v1587_v22  ;;  %v1600_v30 = vsel %vm1599_vm4, %v1587_v22, %v1421_v16 }
0x15ee   :  { %1601 = vst.msk [vmem:[#allocation3] sm:$0xff] %vm32_vm0, %v1600_v30 }
0x15f7   :  { %v2094_v23 = vpop.eup %2093 }
0x15f8   :  { %1590 = vrot.lane.b32.xlu0 %v2094_v23, %s2150_s3 }
0x166a   :  { %v1591_v17 = vpop.permute.xlu0 %1590 }
0x166b   :  { %v1593_v24 = vmul.f32 %v1591_v17, %v1576_v11 }
0x166d   :  { %v1605_v26 = vsel %vm1599_vm4, %v1593_v24, %v1603_v25 }
0x166e   :  { %1607 = vrot.lane.b32.xlu0 %v1605_v26, %s2150_s3 }
0x16e0   :  { %v1608_v27 = vpop.permute.xlu0 %1607 }
0x16e1   :  { %1610 = vst.msk [vmem:[#allocation2] sm:$0xff] %vm32_vm0, %v1608_v27 }
0x16e8   :  { %v1611_v28 = vld [vmem:[#allocation2] sm:$0xff] }
0x16e9   :  { %1612 = vst.msk [vmem:[#allocation7] sm:$0xff] %vm32_vm0, %v1611_v28 }
0x16ea   :  { %2128 = shalt.err (!%p2125_p12)
}
0x16eb   :  { %s2129_s3 = scalar_lea.hbm %s2487_s4, 128 }
0x16ec   :  { %p2130_p13 = scmp.ne.s32.totalorder %s2487_s4, %s2129_s3  ;;  %p2133_p0 = scmp.lt.u32.totalorder %s2129_s3, %s2487_s4 }
0x16ee   :  { %p2135_p1 = pnand %p2133_p0, %p2130_p13 }
0x16f0   :  { %2138 = shalt.err (!%p2135_p1)
}
0x16f1   :  { %1622 = dma.vmem_to_hbm [thread:$0]  %s1620_s8, 128, %s2487_s4, [#allocation6]  }
0x16f2   :  { %2141 = dma.done.wait [#allocation6], 128  }
0x16f3   :  { %2142 = vsyncadd [#allocation6], 4294967168 }
0x16f4   :  { %1626 = vsyncpa [#allocation5], 1 }
0x16f5   :  { %1627 = vsyncpa [#allocation6], 1 }

</bundles_post_ra>
